<compile_context>
chip_gen: v5e
topology: v5e:2x2
jax: 0.10.0
libtpu: 0.0.40
codegen_flags: <defaults>
</compile_context>

<pallas_src>
import jax
import jax.numpy as jnp
from jax.experimental import pallas as pl
from jax.experimental.pallas import tpu as pltpu


def make_mha_kernel(num_heads, head_size, seq_len, q_tile):
    H, hs, T, TQ = num_heads, head_size, seq_len, q_tile
    scale = float(head_size) ** -0.5
    NEG = -1e30  # finite "-inf": no NaN rows even if a row were fully masked

    def mha_kernel(x_ref, wqkv_ref, wp_ref, bp_ref, o_ref, qkv_scr, head_scr):
        # x_ref    : (1, T, C)          full sequence for this batch element
        # wqkv_ref : (C, 3*H*hs)        fused [Q heads | K heads | V heads]
        # wp_ref   : (H*hs, C)          output-projection weight (lane-dense)
        # bp_ref   : (1, C)             output-projection bias
        # o_ref    : (1, TQ, C)         output rows for this Q tile
        # qkv_scr  : (T, 3*H*hs) f32    QKV of the whole sequence (persists over qi)
        # head_scr : (TQ, H*hs)  f32    concatenated head outputs for this tile
        qi = pl.program_id(1)

        # One lane-dense matmul per batch element; native-dtype MXU operands,
        # f32 accumulation via preferred_element_type.  The constant block
        # index across qi means this is not re-DMA'd, and pl.when skips the
        # recompute on all but the first Q tile.
        @pl.when(qi == 0)
        def _():
            qkv_scr[...] = jnp.dot(x_ref[0], wqkv_ref[...],
                                   preferred_element_type=jnp.float32)

        q0 = pl.multiple_of(qi * TQ, TQ)

        # Causal mask for this Q tile against all T keys (loop-invariant).
        row = q0 + jax.lax.broadcasted_iota(jnp.int32, (TQ, T), 0)
        col = jax.lax.broadcasted_iota(jnp.int32, (TQ, T), 1)
        causal = row >= col

        # Scale Q once for all heads (TQ*H*hs elems) instead of scaling the
        # much larger (TQ, T) score slab per head.
        q_all = qkv_scr[pl.ds(q0, TQ), : H * hs] * scale              # (TQ, H*hs)

        for h in range(H):                              # static unroll over heads
            q = q_all[:, h * hs:(h + 1) * hs]                          # (TQ, hs)
            k = qkv_scr[:, (H + h) * hs:(H + h + 1) * hs]              # (T,  hs)
            v = qkv_scr[:, (2 * H + h) * hs:(2 * H + h + 1) * hs]      # (T,  hs)

            # Contract over hs directly; no k.T materialized.
            s = jax.lax.dot_general(q, k, (((1,), (1,)), ((), ())),
                                    preferred_element_type=jnp.float32)
            s = jnp.where(causal, s, NEG)                              # (TQ, T)

            # Numerically stable softmax; normalization uses the EUP reciprocal.
            m = jnp.max(s, axis=-1, keepdims=True)
            e = jnp.exp(s - m)
            p = e * pl.reciprocal(jnp.sum(e, axis=-1, keepdims=True), approx=True)

            # Per-head context, written into the fused head buffer at a static
            # column offset (replaces a lane-axis concatenate).
            head_scr[:, h * hs:(h + 1) * hs] = jnp.dot(
                p, v, preferred_element_type=jnp.float32)              # (TQ, hs)

        # Single full-depth output projection for all heads.
        proj = jnp.dot(head_scr[...], wp_ref[...],
                       preferred_element_type=jnp.float32)             # (TQ, C)
        o_ref[0] = (proj + bp_ref[...]).astype(o_ref.dtype)

    return mha_kernel


def multi_head_attention(x, wq, wk, wv, wp, bp, *, q_tile=None):
    """x: (B, T, C); wq/wk/wv: (H, C, hs) pre-transposed (y = x @ w[h]);
    wp: (H*hs, C) pre-transposed (y = h_cat @ wp); bp: (C,)."""
    B, T, C = x.shape
    H, _, hs = wq.shape
    if q_tile is None:
        q_tile = min(T, 128)
    assert T % q_tile == 0, "T must be divisible by the Q tile size"

    # Fused QKV weight, column order [Q_h0..Q_h{H-1} | K_h0.. | V_h0..].
    def head_cols(w):                       # (H, C, hs) -> (C, H*hs)
        return jnp.transpose(w, (1, 0, 2)).reshape(C, H * hs)

    w_qkv = jnp.concatenate([head_cols(wq), head_cols(wk), head_cols(wv)], axis=1)
    bp2 = bp.reshape(1, C)

    kernel = make_mha_kernel(H, hs, T, q_tile)
    n_q = T // q_tile

    return pl.pallas_call(
        kernel,
        out_shape=jax.ShapeDtypeStruct((B, T, C), x.dtype),
        grid_spec=pltpu.PrefetchScalarGridSpec(
            num_scalar_prefetch=0,
            grid=(B, n_q),
            in_specs=[
                # Full sequence per batch (block index constant across qi).
                pl.BlockSpec((1, T, C), lambda b, qi: (b, 0, 0)),
                # Weights: constant block index for every grid step
                # (fetched once; re-DMA is skipped when the index repeats).
                pl.BlockSpec((C, 3 * H * hs), lambda b, qi: (0, 0)),
                pl.BlockSpec((H * hs, C), lambda b, qi: (0, 0)),
                pl.BlockSpec((1, C), lambda b, qi: (0, 0)),
            ],
            out_specs=pl.BlockSpec((1, q_tile, C), lambda b, qi: (b, qi, 0)),
            scratch_shapes=[
                pltpu.VMEM((T, 3 * H * hs), jnp.float32),   # QKV for whole seq
                pltpu.VMEM((q_tile, H * hs), jnp.float32),  # fused head outputs
            ],
        ),
        compiler_params=pltpu.CompilerParams(
            # Batch axis parallel (megacore); Q-tile axis must stay
            # "arbitrary" since tiles reuse the per-batch QKV scratch.
            dimension_semantics=("parallel", "arbitrary")),
    )(x, w_qkv, wp, bp2)


if __name__ == "__main__":
    # Small, module-consistent shapes (n_embd = num_heads * head_size).
    B, T = 2, 128
    n_embd = 128
    num_heads = 4
    head_size = 32

    key = jax.random.PRNGKey(0)
    k0, k1, k2, k3, k4, k5 = jax.random.split(key, 6)

    x = jax.random.normal(k0, (B, T, n_embd), dtype=jnp.float32)

    w_scale = n_embd ** -0.5
    wq = jax.random.normal(k1, (num_heads, n_embd, head_size), jnp.float32) * w_scale
    wk = jax.random.normal(k2, (num_heads, n_embd, head_size), jnp.float32) * w_scale
    wv = jax.random.normal(k3, (num_heads, n_embd, head_size), jnp.float32) * w_scale
    wp = jax.random.normal(k4, (num_heads * head_size, n_embd), jnp.float32) * w_scale
    bp = jax.random.normal(k5, (n_embd,), jnp.float32) * 0.01

    out = multi_head_attention(x, wq, wk, wv, wp, bp, q_tile=64)
    jax.block_until_ready(out)

    # Pure-JAX reference of the same math (exact softmax division).
    def ref(x):
        q = jnp.einsum("btc,hcs->bhts", x, wq)
        k = jnp.einsum("btc,hcs->bhts", x, wk)
        v = jnp.einsum("btc,hcs->bhts", x, wv)
        wei = jnp.einsum("bhts,bhks->bhtk", q, k) * (head_size ** -0.5)
        mask = jnp.tril(jnp.ones((T, T), bool))
        wei = jnp.where(mask, wei, -jnp.inf)
        wei = jax.nn.softmax(wei, axis=-1)
        o = jnp.einsum("bhtk,bhks->bhts", wei, v)           # (B, H, T, hs)
        o = jnp.transpose(o, (0, 2, 1, 3)).reshape(B, T, num_heads * head_size)
        return o @ wp + bp

    # Tolerance slightly relaxed because the kernel uses the EUP approximate
    # reciprocal for the softmax normalization.
    assert jnp.allclose(out, ref(x), atol=2e-2, rtol=2e-2)
    print("KERNEL_OK")
</pallas_src>

<mosaic_0001>
module attributes {stable_mosaic.version = 11 : i64} {
  func.func @mha_kernel(%arg0: i32, %arg1: i32, %arg2: memref<1x128x128xf32, #tpu.memory_space<vmem>>, %arg3: memref<128x384xf32, #tpu.memory_space<vmem>>, %arg4: memref<128x128xf32, #tpu.memory_space<vmem>>, %arg5: memref<1x128xf32, #tpu.memory_space<vmem>>, %arg6: memref<1x64x128xf32, #tpu.memory_space<vmem>>, %arg7: memref<128x384xf32, #tpu.memory_space<vmem>>, %arg8: memref<64x128xf32, #tpu.memory_space<vmem>>) attributes {dimension_semantics = [#tpu.dimension_semantics<parallel>, #tpu.dimension_semantics<arbitrary>], iteration_bounds = array<i64: 2, 2>, scalar_prefetch = 0 : i64, scratch_operands = 2 : i64, tpu.core_type = #tpu.core_type<tc>, window_params = [{transform_indices = @transform_0, window_bounds = array<i64: 1, 128, 128>}, {pipeline_mode = #tpu.pipeline_mode<synchronous>, transform_indices = @transform_1, window_bounds = array<i64: 128, 384>}, {pipeline_mode = #tpu.pipeline_mode<synchronous>, transform_indices = @transform_2, window_bounds = array<i64: 128, 128>}, {pipeline_mode = #tpu.pipeline_mode<synchronous>, transform_indices = @transform_3, window_bounds = array<i64: 1, 128>}, {transform_indices = @transform_4, window_bounds = array<i64: 1, 64, 128>}]} {
    %c0_i32 = arith.constant 0 : i32
    %0 = arith.cmpi eq, %arg1, %c0_i32 : i32
    %1 = arith.extui %0 : i1 to i32
    %c0_i32_0 = arith.constant 0 : i32
    %2 = arith.cmpi ne, %1, %c0_i32_0 : i32
    scf.if %2 {
      %c0_44 = arith.constant 0 : index
      %c0_45 = arith.constant 0 : index
      %c0_46 = arith.constant 0 : index
      %95 = vector.load %arg2[%c0_44, %c0_45, %c0_46] : memref<1x128x128xf32, #tpu.memory_space<vmem>>, vector<1x128x128xf32>
      %96 = vector.shape_cast %95 : vector<1x128x128xf32> to vector<128x128xf32>
      %c0_47 = arith.constant 0 : index
      %c0_48 = arith.constant 0 : index
      %97 = vector.load %arg3[%c0_47, %c0_48] : memref<128x384xf32, #tpu.memory_space<vmem>>, vector<128x384xf32>
      %cst_49 = arith.constant dense<0.000000e+00> : vector<128x384xf32>
      %98 = tpu.matmul %96, %97, %cst_49 {dimension_numbers = #tpu.dot_dimension_numbers<[1], [0], [0], [1], [0, 0, 1, 1], [], []>} : vector<128x128xf32>, vector<128x384xf32>, vector<128x384xf32> -> vector<128x384xf32>
      %c0_50 = arith.constant 0 : index
      %c0_51 = arith.constant 0 : index
      %99 = vector.load %arg7[%c0_50, %c0_51] : memref<128x384xf32, #tpu.memory_space<vmem>>, vector<128x384xf32>
      tpu.vector_store %arg7[%c0_50, %c0_51], %98 {strides = array<i32>} : memref<128x384xf32, #tpu.memory_space<vmem>>, vector<128x384xf32>,
    } else {
    }
    %c64_i32 = arith.constant 64 : i32
    %3 = arith.muli %arg1, %c64_i32 : i32
    %4 = tpu.assume_multiple %3, 64 : i32
    %5 = tpu.iota {dimensions = array<i32: 0>} : vector<64x128xi32>
    %6 = vector.broadcast %4 : i32 to vector<64x128xi32>
    %7 = arith.addi %6, %5 : vector<64x128xi32>
    %8 = tpu.iota {dimensions = array<i32: 1>} : vector<64x128xi32>
    %9 = arith.cmpi sge, %7, %8 : vector<64x128xi32>
    %10 = arith.index_cast %4 : i32 to index
    %c0 = arith.constant 0 : index
    %11 = vector.load %arg7[%10, %c0] : memref<128x384xf32, #tpu.memory_space<vmem>>, vector<64x128xf32>
    %cst = arith.constant 0.176776692 : f32
    %12 = vector.broadcast %cst : f32 to vector<64x128xf32>
    %13 = arith.mulf %11, %12 : vector<64x128xf32>
    %14 = vector.extract_strided_slice %13 {offsets = [0, 0], sizes = [64, 32], strides = [1, 1]} : vector<64x128xf32> to vector<64x32xf32>
    %c0_1 = arith.constant 0 : index
    %c128 = arith.constant 128 : index
    %15 = vector.load %arg7[%c0_1, %c128] : memref<128x384xf32, #tpu.memory_space<vmem>>, vector<128x32xf32>
    %c0_2 = arith.constant 0 : index
    %c256 = arith.constant 256 : index
    %16 = vector.load %arg7[%c0_2, %c256] : memref<128x384xf32, #tpu.memory_space<vmem>>, vector<128x32xf32>
    %cst_3 = arith.constant dense<0.000000e+00> : vector<64x128xf32>
    %17 = tpu.matmul %14, %15, %cst_3 {dimension_numbers = #tpu.dot_dimension_numbers<[1], [1], [0], [0], [0, 0, 1, 0], [], []>} : vector<64x32xf32>, vector<128x32xf32>, vector<64x128xf32> -> vector<64x128xf32>
    %cst_4 = arith.constant -1.000000e+30 : f32
    %18 = vector.broadcast %cst_4 : f32 to vector<64x128xf32>
    %19 = arith.select %9, %17, %18 : vector<64x128xi1>, vector<64x128xf32>
    %cst_5 = arith.constant dense<0xFF800000> : vector<64xf32>
    %20 = vector.multi_reduction <maximumf>, %19, %cst_5 [1] : vector<64x128xf32> to vector<64xf32>
    %21 = vector.shape_cast %20 : vector<64xf32> to vector<64x1xf32>
    %22 = vector.broadcast %21 : vector<64x1xf32> to vector<64x128xf32>
    %23 = arith.subf %19, %22 : vector<64x128xf32>
    %24 = math.exp %23 : vector<64x128xf32>
    %cst_6 = arith.constant dense<0.000000e+00> : vector<64xf32>
    %25 = vector.multi_reduction <add>, %24, %cst_6 [1] : vector<64x128xf32> to vector<64xf32>
    %26 = vector.shape_cast %25 : vector<64xf32> to vector<64x1xf32>
    %27 = tpu.reciprocal %26 {approx = true} : vector<64x1xf32> -> vector<64x1xf32>
    %28 = vector.broadcast %27 : vector<64x1xf32> to vector<64x128xf32>
    %29 = arith.mulf %24, %28 : vector<64x128xf32>
    %cst_7 = arith.constant dense<0.000000e+00> : vector<64x32xf32>
    %30 = tpu.matmul %29, %16, %cst_7 {dimension_numbers = #tpu.dot_dimension_numbers<[1], [0], [0], [1], [0, 0, 1, 1], [], []>} : vector<64x128xf32>, vector<128x32xf32>, vector<64x32xf32> -> vector<64x32xf32>
    %c0_8 = arith.constant 0 : index
    %c0_9 = arith.constant 0 : index
    %31 = vector.load %arg8[%c0_8, %c0_9] : memref<64x128xf32, #tpu.memory_space<vmem>>, vector<64x32xf32>
    tpu.vector_store %arg8[%c0_8, %c0_9], %30 {strides = array<i32>} : memref<64x128xf32, #tpu.memory_space<vmem>>, vector<64x32xf32>,
    %32 = vector.extract_strided_slice %13 {offsets = [0, 32], sizes = [64, 32], strides = [1, 1]} : vector<64x128xf32> to vector<64x32xf32>
    %c0_10 = arith.constant 0 : index
    %c160 = arith.constant 160 : index
    %33 = vector.load %arg7[%c0_10, %c160] : memref<128x384xf32, #tpu.memory_space<vmem>>, vector<128x32xf32>
    %c0_11 = arith.constant 0 : index
    %c288 = arith.constant 288 : index
    %34 = vector.load %arg7[%c0_11, %c288] : memref<128x384xf32, #tpu.memory_space<vmem>>, vector<128x32xf32>
    %cst_12 = arith.constant dense<0.000000e+00> : vector<64x128xf32>
    %35 = tpu.matmul %32, %33, %cst_12 {dimension_numbers = #tpu.dot_dimension_numbers<[1], [1], [0], [0], [0, 0, 1, 0], [], []>} : vector<64x32xf32>, vector<128x32xf32>, vector<64x128xf32> -> vector<64x128xf32>
    %cst_13 = arith.constant -1.000000e+30 : f32
    %36 = vector.broadcast %cst_13 : f32 to vector<64x128xf32>
    %37 = arith.select %9, %35, %36 : vector<64x128xi1>, vector<64x128xf32>
    %cst_14 = arith.constant dense<0xFF800000> : vector<64xf32>
    %38 = vector.multi_reduction <maximumf>, %37, %cst_14 [1] : vector<64x128xf32> to vector<64xf32>
    %39 = vector.shape_cast %38 : vector<64xf32> to vector<64x1xf32>
    %40 = vector.broadcast %39 : vector<64x1xf32> to vector<64x128xf32>
    %41 = arith.subf %37, %40 : vector<64x128xf32>
    %42 = math.exp %41 : vector<64x128xf32>
    %cst_15 = arith.constant dense<0.000000e+00> : vector<64xf32>
    %43 = vector.multi_reduction <add>, %42, %cst_15 [1] : vector<64x128xf32> to vector<64xf32>
    %44 = vector.shape_cast %43 : vector<64xf32> to vector<64x1xf32>
    %45 = tpu.reciprocal %44 {approx = true} : vector<64x1xf32> -> vector<64x1xf32>
    %46 = vector.broadcast %45 : vector<64x1xf32> to vector<64x128xf32>
    %47 = arith.mulf %42, %46 : vector<64x128xf32>
    %cst_16 = arith.constant dense<0.000000e+00> : vector<64x32xf32>
    %48 = tpu.matmul %47, %34, %cst_16 {dimension_numbers = #tpu.dot_dimension_numbers<[1], [0], [0], [1], [0, 0, 1, 1], [], []>} : vector<64x128xf32>, vector<128x32xf32>, vector<64x32xf32> -> vector<64x32xf32>
    %c0_17 = arith.constant 0 : index
    %c32 = arith.constant 32 : index
    %49 = vector.load %arg8[%c0_17, %c32] : memref<64x128xf32, #tpu.memory_space<vmem>>, vector<64x32xf32>
    tpu.vector_store %arg8[%c0_17, %c32], %48 {strides = array<i32>} : memref<64x128xf32, #tpu.memory_space<vmem>>, vector<64x32xf32>,
    %50 = vector.extract_strided_slice %13 {offsets = [0, 64], sizes = [64, 32], strides = [1, 1]} : vector<64x128xf32> to vector<64x32xf32>
    %c0_18 = arith.constant 0 : index
    %c192 = arith.constant 192 : index
    %51 = vector.load %arg7[%c0_18, %c192] : memref<128x384xf32, #tpu.memory_space<vmem>>, vector<128x32xf32>
    %c0_19 = arith.constant 0 : index
    %c320 = arith.constant 320 : index
    %52 = vector.load %arg7[%c0_19, %c320] : memref<128x384xf32, #tpu.memory_space<vmem>>, vector<128x32xf32>
    %cst_20 = arith.constant dense<0.000000e+00> : vector<64x128xf32>
    %53 = tpu.matmul %50, %51, %cst_20 {dimension_numbers = #tpu.dot_dimension_numbers<[1], [1], [0], [0], [0, 0, 1, 0], [], []>} : vector<64x32xf32>, vector<128x32xf32>, vector<64x128xf32> -> vector<64x128xf32>
    %cst_21 = arith.constant -1.000000e+30 : f32
    %54 = vector.broadcast %cst_21 : f32 to vector<64x128xf32>
    %55 = arith.select %9, %53, %54 : vector<64x128xi1>, vector<64x128xf32>
    %cst_22 = arith.constant dense<0xFF800000> : vector<64xf32>
    %56 = vector.multi_reduction <maximumf>, %55, %cst_22 [1] : vector<64x128xf32> to vector<64xf32>
    %57 = vector.shape_cast %56 : vector<64xf32> to vector<64x1xf32>
    %58 = vector.broadcast %57 : vector<64x1xf32> to vector<64x128xf32>
    %59 = arith.subf %55, %58 : vector<64x128xf32>
    %60 = math.exp %59 : vector<64x128xf32>
    %cst_23 = arith.constant dense<0.000000e+00> : vector<64xf32>
    %61 = vector.multi_reduction <add>, %60, %cst_23 [1] : vector<64x128xf32> to vector<64xf32>
    %62 = vector.shape_cast %61 : vector<64xf32> to vector<64x1xf32>
    %63 = tpu.reciprocal %62 {approx = true} : vector<64x1xf32> -> vector<64x1xf32>
    %64 = vector.broadcast %63 : vector<64x1xf32> to vector<64x128xf32>
    %65 = arith.mulf %60, %64 : vector<64x128xf32>
    %cst_24 = arith.constant dense<0.000000e+00> : vector<64x32xf32>
    %66 = tpu.matmul %65, %52, %cst_24 {dimension_numbers = #tpu.dot_dimension_numbers<[1], [0], [0], [1], [0, 0, 1, 1], [], []>} : vector<64x128xf32>, vector<128x32xf32>, vector<64x32xf32> -> vector<64x32xf32>
    %c0_25 = arith.constant 0 : index
    %c64 = arith.constant 64 : index
    %67 = vector.load %arg8[%c0_25, %c64] : memref<64x128xf32, #tpu.memory_space<vmem>>, vector<64x32xf32>
    tpu.vector_store %arg8[%c0_25, %c64], %66 {strides = array<i32>} : memref<64x128xf32, #tpu.memory_space<vmem>>, vector<64x32xf32>,
    %68 = vector.extract_strided_slice %13 {offsets = [0, 96], sizes = [64, 32], strides = [1, 1]} : vector<64x128xf32> to vector<64x32xf32>
    %c0_26 = arith.constant 0 : index
    %c224 = arith.constant 224 : index
    %69 = vector.load %arg7[%c0_26, %c224] : memref<128x384xf32, #tpu.memory_space<vmem>>, vector<128x32xf32>
    %c0_27 = arith.constant 0 : index
    %c352 = arith.constant 352 : index
    %70 = vector.load %arg7[%c0_27, %c352] : memref<128x384xf32, #tpu.memory_space<vmem>>, vector<128x32xf32>
    %cst_28 = arith.constant dense<0.000000e+00> : vector<64x128xf32>
    %71 = tpu.matmul %68, %69, %cst_28 {dimension_numbers = #tpu.dot_dimension_numbers<[1], [1], [0], [0], [0, 0, 1, 0], [], []>} : vector<64x32xf32>, vector<128x32xf32>, vector<64x128xf32> -> vector<64x128xf32>
    %cst_29 = arith.constant -1.000000e+30 : f32
    %72 = vector.broadcast %cst_29 : f32 to vector<64x128xf32>
    %73 = arith.select %9, %71, %72 : vector<64x128xi1>, vector<64x128xf32>
    %cst_30 = arith.constant dense<0xFF800000> : vector<64xf32>
    %74 = vector.multi_reduction <maximumf>, %73, %cst_30 [1] : vector<64x128xf32> to vector<64xf32>
    %75 = vector.shape_cast %74 : vector<64xf32> to vector<64x1xf32>
    %76 = vector.broadcast %75 : vector<64x1xf32> to vector<64x128xf32>
    %77 = arith.subf %73, %76 : vector<64x128xf32>
    %78 = math.exp %77 : vector<64x128xf32>
    %cst_31 = arith.constant dense<0.000000e+00> : vector<64xf32>
    %79 = vector.multi_reduction <add>, %78, %cst_31 [1] : vector<64x128xf32> to vector<64xf32>
    %80 = vector.shape_cast %79 : vector<64xf32> to vector<64x1xf32>
    %81 = tpu.reciprocal %80 {approx = true} : vector<64x1xf32> -> vector<64x1xf32>
    %82 = vector.broadcast %81 : vector<64x1xf32> to vector<64x128xf32>
    %83 = arith.mulf %78, %82 : vector<64x128xf32>
    %cst_32 = arith.constant dense<0.000000e+00> : vector<64x32xf32>
    %84 = tpu.matmul %83, %70, %cst_32 {dimension_numbers = #tpu.dot_dimension_numbers<[1], [0], [0], [1], [0, 0, 1, 1], [], []>} : vector<64x128xf32>, vector<128x32xf32>, vector<64x32xf32> -> vector<64x32xf32>
    %c0_33 = arith.constant 0 : index
    %c96 = arith.constant 96 : index
    %85 = vector.load %arg8[%c0_33, %c96] : memref<64x128xf32, #tpu.memory_space<vmem>>, vector<64x32xf32>
    tpu.vector_store %arg8[%c0_33, %c96], %84 {strides = array<i32>} : memref<64x128xf32, #tpu.memory_space<vmem>>, vector<64x32xf32>,
    %c0_34 = arith.constant 0 : index
    %c0_35 = arith.constant 0 : index
    %86 = vector.load %arg8[%c0_34, %c0_35] : memref<64x128xf32, #tpu.memory_space<vmem>>, vector<64x128xf32>
    %c0_36 = arith.constant 0 : index
    %c0_37 = arith.constant 0 : index
    %87 = vector.load %arg4[%c0_36, %c0_37] : memref<128x128xf32, #tpu.memory_space<vmem>>, vector<128x128xf32>
    %cst_38 = arith.constant dense<0.000000e+00> : vector<64x128xf32>
    %88 = tpu.matmul %86, %87, %cst_38 {dimension_numbers = #tpu.dot_dimension_numbers<[1], [0], [0], [1], [0, 0, 1, 1], [], []>} : vector<64x128xf32>, vector<128x128xf32>, vector<64x128xf32> -> vector<64x128xf32>
    %c0_39 = arith.constant 0 : index
    %c0_40 = arith.constant 0 : index
    %89 = vector.load %arg5[%c0_39, %c0_40] : memref<1x128xf32, #tpu.memory_space<vmem>>, vector<1x128xf32>
    %90 = vector.broadcast %89 : vector<1x128xf32> to vector<64x128xf32>
    %91 = arith.addf %88, %90 : vector<64x128xf32>
    %c0_41 = arith.constant 0 : index
    %c0_42 = arith.constant 0 : index
    %c0_43 = arith.constant 0 : index
    %92 = vector.load %arg6[%c0_41, %c0_42, %c0_43] : memref<1x64x128xf32, #tpu.memory_space<vmem>>, vector<1x64x128xf32>
    %93 = vector.shape_cast %92 : vector<1x64x128xf32> to vector<64x128xf32>
    %94 = vector.shape_cast %91 : vector<64x128xf32> to vector<1x64x128xf32>
    tpu.vector_store %arg6[%c0_41, %c0_42, %c0_43], %94 {strides = array<i32>} : memref<1x64x128xf32, #tpu.memory_space<vmem>>, vector<1x64x128xf32>,
    return
  }
  func.func @transform_0(%arg0: i32, %arg1: i32) -> (i32, i32, i32) {
    %c0_i32 = arith.constant 0 : i32
    %c0_i32_0 = arith.constant 0 : i32
    %c0_i32_1 = arith.constant 0 : i32
    return %arg0, %c0_i32, %c0_i32_0 : i32, i32, i32
  }
  func.func @transform_1(%arg0: i32, %arg1: i32) -> (i32, i32) {
    %c0_i32 = arith.constant 0 : i32
    %c0_i32_0 = arith.constant 0 : i32
    %c0_i32_1 = arith.constant 0 : i32
    return %c0_i32, %c0_i32_0 : i32, i32
  }
  func.func @transform_2(%arg0: i32, %arg1: i32) -> (i32, i32) {
    %c0_i32 = arith.constant 0 : i32
    %c0_i32_0 = arith.constant 0 : i32
    %c0_i32_1 = arith.constant 0 : i32
    return %c0_i32, %c0_i32_0 : i32, i32
  }
  func.func @transform_3(%arg0: i32, %arg1: i32) -> (i32, i32) {
    %c0_i32 = arith.constant 0 : i32
    %c0_i32_0 = arith.constant 0 : i32
    %c0_i32_1 = arith.constant 0 : i32
    return %c0_i32, %c0_i32_0 : i32, i32
  }
  func.func @transform_4(%arg0: i32, %arg1: i32) -> (i32, i32, i32) {
    %c0_i32 = arith.constant 0 : i32
    %c0_i32_0 = arith.constant 0 : i32
    return %arg0, %arg1, %c0_i32 : i32, i32, i32
  }
}

</mosaic_0001>

<bundles_post_ra>
// kernel: tpu_custom_call.1
= control target key start
LH: loop header
LB: loop body
LE: loop exit
PB: predicated region body
PF: predicated region fallthrough
CT: control target
= control target key end

     0   :  { %s4425_s0 = inlined_call_operand.hbm [shape: f32[2,128,128], index: 0, kind: input, shape index: {}]   ;;  %s4426_s1 = inlined_call_operand.hbm [shape: f32[128,384], index: 1, kind: input, shape index: {}]   ;;  %s4427_s2 = inlined_call_operand.hbm [shape: f32[128,128], index: 2, kind: input, shape index: {}]   ;;  %s4428_s3 = inlined_call_operand.vmem [shape: f32[1,128], index: 3, kind: input, shape index: {}]   ;;  %s4429_s4 = inlined_call_operand.hbm [shape: f32[2,128,128], index: 4, kind: output, shape index: {}]  }
   0x1   :  { %4440 = sst [smem:[#allocation20_spill]] %s4426_s1 }
   0x2   :  { %4441 = sst [smem:[#allocation21_spill]] %s4427_s2 }
   0x3   :  { %4442 = sst [smem:[#allocation22_spill]] %s4429_s4 }
   0x4   :  { %9 = vsyncpa [#allocation5], 0 }
   0x5   :  { %11 = vsyncpa [#allocation5 + $0x1], 0 }
   0x6   :  { %12 = vsyncpa [#allocation8], 0 }
   0x7   :  { %13 = vsyncpa [#allocation6], 0 }
   0x8   :  { %15 = vsyncpa [#allocation6 + $0x1], 0  ;;  %s3158_s15 = smov 0   ;;  %s3160_s16 = smov 0  }
   0x9   :  { %s3162_s17 = smov 0   ;;  %s3164_s18 = smov 0  }
   0xa   :  { %s3166_s19 = smov 0   ;;  %s3168_s20 = smov 0  }
   0xb   :  { %s3170_s21 = smov 0   ;;  %s3172_s22 = smov 0  }
   0xc   :  { %s3174_s23 = smov 0   ;;  %s3176_s24 = smov 0  }
   0xd   :  { %s3178_s25 = smov 0  }
   0xe LB: > { %4443 = sst [smem:[#allocation14_spill]] %s3080_s15  ;;  %s2338_s26 = sadd.s32 4294967295, %s3120_s25   ;;  %s3120_s25 = sphi %s3178_s25, %s21_s25   ;;  %s3116_s24 = sphi %s3176_s24, %s4474_s24   ;;  %s3112_s23 = sphi %s3174_s23, %s4465_s23   ;;  %s3108_s22 = sphi %s3172_s22, %s4473_s22   ;;  %s3104_s21 = sphi %s3170_s21, %s4464_s21   ;;  %s3100_s20 = sphi %s3168_s20, %s4472_s20   ;;  %s3096_s19 = sphi %s3166_s19, %s4471_s19   ;;  %s3092_s18 = sphi %s3164_s18, %s4470_s18   ;;  %s3088_s17 = sphi %s3162_s17, %s4469_s17   ;;  %s3084_s16 = sphi %s3160_s16, %s4468_s16   ;;  %s3080_s15 = sphi %s3158_s15, %s4467_s15  }
   0xf   : > { %4444 = sst [smem:[#allocation15_spill]] %s3112_s23  ;;  %s2339_s27 = sadd.s32 4294967294, %s3120_s25  }
  0x10   : > { %p53_p0 = scmp.ne.s32.totalorder %s3096_s19, %s3092_s18  ;;  %p3214_p1 = scmp.eq.s32.totalorder %s2338_s26, 0 }
  0x11   : > { %p141_p2 = scmp.ne.s32.totalorder %s3088_s17, %s3084_s16  ;;  %p142_p3 = scmp.eq.s32.totalorder %s2338_s26, 3 }
  0x12   : > { %p3222_p4 = por %p3214_p1, %p53_p0  ;;  %p147_p5 = scmp.ne.s32.totalorder %s3084_s16, %s3080_s15 }
  0x13   : > { %p3228_p6 = por %p142_p3, %p141_p2  ;;  %p148_p7 = scmp.eq.s32.totalorder %s2339_s27, 3 }
  0x14   : > { %p2340_p8 = scmp.ge.s32.totalorder %s3120_s25, 1  ;;  %p155_p9 = scmp.lt.s32.totalorder %s3120_s25, 5 }
  0x15   : > { %s4447_s30 = scalar_select %p3228_p6, 1, 0 }
  0x16   : > { %p3234_p10 = por %p148_p7, %p147_p5  ;;  %p3238_p11 = pnand %p2340_p8, %p155_p9 }
  0x17   : > { %4448 = sst [smem:[#allocation16_spill]] %s4447_s30  ;;  %s3122_s10 = smov [#allocation7]  }
  0x18   : > { %s4449_s5 = scalar_select %p3234_p10, 1, 0 }
  0x19   : > { %s4452_s1 = sld [smem:[#allocation20_spill]]  ;;  %p2535_p12 = pneg %p3238_p11 }
  0x1a   : > { %4450 = sst [smem:[#allocation17_spill]] %s4449_s5  ;;  %s168_s11 = sshll.u32 %s3122_s10, 4  ;;  %s169_s11 = int_to_ptr.vmem [resolvable:$true] %s168_s11 }
  0x1b   : > { %p2536_p13 = pnand %p2535_p12, %p3214_p1  ;;  %s4453_s2 = sld [smem:[#allocation21_spill]] }
  0x1c   : > { %s3123_s18 = smov 384   ;;  %s3124_s26 = smov 24  }
  0x1d   : > { %s3125_s27 = smov [#allocation9]   ;;  %s4430_s8 = smov 128  }
  0x1e   : > { %s182_s7 = sshll.u32 %s3125_s27, 4  ;;  %s4431_s10 = smov 8   ;;  %s183_s7 = int_to_ptr.vmem [resolvable:$true] %s182_s7 }
  0x1f   : > { %s166_s9 = sshll.u32 %s4452_s1, 4  ;;  %s30_s12 = sadd.s32 1, %s3112_s23  ;;  %s167_s9 = int_to_ptr.hbm [resolvable:$true] %s166_s9 }
  0x20   : > { %2538 = dma.hbm_to_vmem [thread:$0]  (!%p2536_p13), %s167_s9, 6144, %s169_s11, [#allocation8], %s3123_s18, %s3123_s18, %s3124_s26  }
  0x21   : > { %s180_s14 = sshll.u32 %s4453_s2, 4  ;;  %p31_p0 = scmp.ge.s32.totalorder %s30_s12, 2  ;;  %s181_s14 = int_to_ptr.hbm [resolvable:$true] %s180_s14 }
  0x22   : > { %2541 = dma.hbm_to_vmem [thread:$0]  (!%p2536_p13), %s181_s14, 2048, %s183_s7, [#allocation8], %s4430_s8, %s4430_s8, %s4431_s10  }
  0x23   : > { %s33_s13 = sadd.s32 1, %s3116_s24  ;;  %p47_p2 = scmp.ne.s32.totalorder %s3100_s20, %s3096_s19 }
  0x24   : > { %s4476_s12 = smov (%p31_p0, %s30_s12), 0  ;;  %s4478_s13 = smov (!%p31_p0, %s33_s13), %s3116_s24 }
  0x25   : > { %4454 = sst [smem:[#allocation18_spill]] %s4476_s12  ;;  %s40_s9 = sadd.s32 1, %s3100_s20 }
  0x26   : > { %p48_p3 = scmp.eq.s32.totalorder %s3120_s25, 0  ;;  %p35_p5 = scmp.ge.s32.totalorder %s4478_s13, 2 }
  0x27   : > { %s127_s11 = ssub.s32 %s3112_s23, %s4476_s12  ;;  %s131_s14 = sadd.s32 1, %s3088_s17 }
  0x28   : > { %p3266_p7 = por %p48_p3, %p47_p2  ;;  %s4480_s13 = smov (%p35_p5, %s4478_s13), 0 }
  0x29   : > { %4456 = sst [smem:[#allocation19_spill]] %s4480_s13  ;;  %p2552_p8 = scmp.lt.s32.totalorder %s3120_s25, 4 }
  0x2a   : > { %s199_s26 = sand.u32 1, %s3100_s20   ;;  %s37_s27 = ssub.s32 %s3116_s24, %s4480_s13 }
  0x2b   : > { %s2457_s7 = sshll.u32 %s3116_s24, 7  ;;  %p38_p9 = scmp.eq.s32.totalorder %s37_s27, 0 }
  0x2c   : > { %s128_s8 = sor.u32 %s127_s11, %s37_s27  ;;  %s2344_s10 = sshll.u32 %s199_s26, 7 }
  0x2d   : > { %p129_p12 = scmp.eq.s32.totalorder %s128_s8, 0  ;;  %s208_s5 = scalar_lea.hbm %s4425_s0, %s2457_s7 }
  0x2e   : > { %s3279_s1 = scalar_select %p38_p9, %s3100_s20, %s40_s9  }
  0x2f   : > { %s3282_s2 = scalar_select %p129_p12, %s3088_s17, %s131_s14  }
  0x30   : > { %s209_s15 = sshll.u32 %s208_s5, 4  ;;  %s203_s4 = scalar_lea.vmem [#allocation4], %s2344_s10  ;;  %s210_s15 = int_to_ptr.hbm [resolvable:$true] %s209_s15 }
  0x31   : > { %s211_s30 = sshll.u32 %s203_s4, 4  ;;  %p2543_p13 = pnand %p2552_p8, %p3266_p7  ;;  %s212_s30 = int_to_ptr.vmem [resolvable:$true] %s211_s30 }
  0x32   : > { %s200_s13 = scalar_lea.sflag [#allocation5], %s199_s26  ;;  %s4457_s11 = smov 8  }
  0x33   : > { %s4458_s8 = smov 128   ;;  %223 = sbr.rel (%p3238_p11) target bundleno = 2049 (0x801), region = 36 }
  0x34   : > { %2545 = dma.hbm_to_vmem [thread:$0]  (!%p2543_p13), %s210_s15, 2048, %s212_s30, %s200_s13, %s4458_s8, %s4458_s8, %s4457_s11  }
  0x35   : > { %s225_s23 = sand.u32 (!%p3238_p11), 1, %s3096_s19  }
  0x36   : > { %s2348_s12 = sshll.u32 (!%p3238_p11), %s225_s23, 7  ;;  %s226_s5 = scalar_lea.sflag (!%p3238_p11), [#allocation5], %s225_s23 }
  0x37   : > { %s3297_s10 = scalar_lea.vmem (!%p3238_p11), [#allocation4], %s2348_s12 }
  0x38   : > { %3067 = dma.done.wait (%p3222_p4), %s226_s5, 2048  }
  0x39   : > { %3069 = vsyncadd (%p3222_p4), %s226_s5, 4294965248 }
  0x3a   : > { %3071 = dma.done.wait (%p3214_p1), [#allocation8], 8192  }
  0x3b   : > { %3073 = vsyncadd (%p3214_p1), [#allocation8], 4294959104  ;;  %s262_s4 = sand.u32 1, %s3084_s16   ;;  %p2352_p11 = scmp.ne.s32.totalorder %s3104_s21, 0 }
  0x3c   : > { %s2351_s15 = sshll.u32 %s262_s4, 6 }
  0x3d   : > { %s3310_s30 = scalar_lea.vmem [#allocation10], %s2351_s15  ;;  %269 = sbr.rel (%p2352_p11) target bundleno = 320 (0x140), region = 52 }
  0x42   : > { %v331_v0 = vld [vmem:[#allocation7 + $0x168] sm:$0xff]  ;;  %v3313_v1 = vld [vmem:[#allocation7 + $0x178] sm:$0xff]  ;;  %v328_v2 = vld [vmem:[#allocation7 + $0x150] sm:$0xff] }
  0x43   : > { %2459 = vmatpush.msra.mxu3 %v331_v0  ;;  %464 = vmatpush.msra.mxu2 %v3313_v1  ;;  %v3316_v3 = vld [vmem:[#allocation7 + $0x160] sm:$0xff]  ;;  %v325_v4 = vld [vmem:[#allocation7 + $0x138] sm:$0xff]  ;;  %v3318_v5 = vld [vmem:[#allocation7 + $0x148] sm:$0xff] }
  0x44   : > { %334 = vmatpush.msra.mxu0 %v331_v0  ;;  %v3320_v6 = vld [vmem:[#allocation7 + $0x170] sm:$0xff]  ;;  %v3323_v7 = vld [vmem:[#allocation7 + $0x158] sm:$0xff]  ;;  %v322_v8 = vld [vmem:[#allocation7 + $0x120] sm:$0xff] }
  0x45   : > { %2460 = vmatpush.msra.mxu3 %v328_v2  ;;  %465 = vmatpush.msra.mxu2 %v3316_v3  ;;  %v3326_v9 = vld [vmem:[#allocation7 + $0x130] sm:$0xff]  ;;  %v3329_v10 = vld [vmem:[#allocation7 + $0x140] sm:$0xff]  ;;  %v319_v11 = vld [vmem:[#allocation7 + $0x108] sm:$0xff] }
  0x46   : > { %399 = vmatpush.msra.mxu1 %v3320_v6  ;;  %335 = vmatpush.msra.mxu0 %v328_v2  ;;  %v3332_v12 = vld [vmem:[#allocation7 + $0x118] sm:$0xff]  ;;  %v3335_v13 = vld [vmem:[#allocation7 + $0x128] sm:$0xff]  ;;  %v316_v14 = vld [vmem:[#allocation7 + $0xf0] sm:$0xff] }
  0x47   : > { %2461 = vmatpush.msra.mxu3 %v325_v4  ;;  %466 = vmatpush.msra.mxu2 %v3318_v5  ;;  %v3338_v15 = vld [vmem:[#allocation7 + $0x100] sm:$0xff]  ;;  %v3341_v16 = vld [vmem:[#allocation7 + $0x110] sm:$0xff]  ;;  %v313_v17 = vld [vmem:[#allocation7 + $0xd8] sm:$0xff] }
  0x48   : > { %400 = vmatpush.msra.mxu1 %v3323_v7  ;;  %336 = vmatpush.msra.mxu0 %v325_v4  ;;  %v3344_v18 = vld [vmem:[#allocation7 + $0xe8] sm:$0xff]  ;;  %v3347_v19 = vld [vmem:[#allocation7 + $0xf8] sm:$0xff]  ;;  %v310_v20 = vld [vmem:[#allocation7 + $0xc0] sm:$0xff] }
  0x49   : > { %2462 = vmatpush.msra.mxu3 %v322_v8  ;;  %467 = vmatpush.msra.mxu2 %v3326_v9  ;;  %v3350_v21 = vld [vmem:[#allocation7 + $0xd0] sm:$0xff]  ;;  %v3353_v22 = vld [vmem:[#allocation7 + $0xe0] sm:$0xff]  ;;  %v307_v23 = vld [vmem:[#allocation7 + $0xa8] sm:$0xff] }
  0x4a   : > { %401 = vmatpush.msra.mxu1 %v3329_v10  ;;  %337 = vmatpush.msra.mxu0 %v322_v8  ;;  %v3356_v24 = vld [vmem:[#allocation7 + $0xb8] sm:$0xff]  ;;  %v3359_v25 = vld [vmem:[#allocation7 + $0xc8] sm:$0xff]  ;;  %v304_v26 = vld [vmem:[#allocation7 + $0x90] sm:$0xff] }
  0x4b   : > { %2463 = vmatpush.msra.mxu3 %v319_v11  ;;  %468 = vmatpush.msra.mxu2 %v3332_v12  ;;  %v3362_v27 = vld [vmem:[#allocation7 + $0xa0] sm:$0xff]  ;;  %v3365_v28 = vld [vmem:[#allocation7 + $0xb0] sm:$0xff]  ;;  %v301_v29 = vld [vmem:[#allocation7 + $0x78] sm:$0xff] }
  0x4c   : > { %402 = vmatpush.msra.mxu1 %v3335_v13  ;;  %338 = vmatpush.msra.mxu0 %v319_v11  ;;  %v3368_v30 = vld [vmem:[#allocation7 + $0x88] sm:$0xff]  ;;  %v3371_v31 = vld [vmem:[#allocation7 + $0x98] sm:$0xff]  ;;  %v298_v32 = vld [vmem:[#allocation7 + $0x60] sm:$0xff] }
  0x4d   : > { %2464 = vmatpush.msra.mxu3 %v316_v14  ;;  %469 = vmatpush.msra.mxu2 %v3338_v15  ;;  %v3374_v33 = vld [vmem:[#allocation7 + $0x70] sm:$0xff]  ;;  %v3377_v34 = vld [vmem:[#allocation7 + $0x80] sm:$0xff]  ;;  %v295_v35 = vld [vmem:[#allocation7 + $0x48] sm:$0xff] }
  0x4e   : > { %403 = vmatpush.msra.mxu1 %v3341_v16  ;;  %339 = vmatpush.msra.mxu0 %v316_v14  ;;  %v3380_v36 = vld [vmem:[#allocation7 + $0x58] sm:$0xff]  ;;  %v299_v37 = vld [vmem:[#allocation7 + $0x68] sm:$0xff]  ;;  %v292_v38 = vld [vmem:[#allocation7 + $0x30] sm:$0xff] }
  0x4f   : > { %2465 = vmatpush.msra.mxu3 %v313_v17  ;;  %470 = vmatpush.msra.mxu2 %v3344_v18  ;;  %v3384_v39 = vld [vmem:[#allocation7 + $0x40] sm:$0xff]  ;;  %v296_v40 = vld [vmem:[#allocation7 + $0x50] sm:$0xff]  ;;  %v289_v41 = vld [vmem:[#allocation7 + $0x18] sm:$0xff] }
  0x50   : > { %404 = vmatpush.msra.mxu1 %v3347_v19  ;;  %340 = vmatpush.msra.mxu0 %v313_v17  ;;  %v3387_v42 = vld [vmem:[#allocation7 + $0x28] sm:$0xff]  ;;  %v293_v43 = vld [vmem:[#allocation7 + $0x38] sm:$0xff]  ;;  %v286_v44 = vld [vmem:[#allocation7] sm:$0xff] }
  0x51   : > { %2466 = vmatpush.msra.mxu3 %v310_v20  ;;  %471 = vmatpush.msra.mxu2 %v3350_v21  ;;  %v3390_v45 = vld [vmem:[#allocation7 + $0x10] sm:$0xff]  ;;  %v3394_v46 = vld [vmem:[%s3297_s10 + $0x60] sm:$0xff]  ;;  %v287_v49 = vld [vmem:[#allocation7 + $0x8] sm:$0xff] }
  0x52   : > { %405 = vmatpush.msra.mxu1 %v3353_v22  ;;  %341 = vmatpush.msra.mxu0 %v310_v20  ;;  %v270_v47 = vld [vmem:[%s3297_s10] sm:$0xff]  ;;  %v3403_v50 = vld [vmem:[%s3297_s10 + $0x68] sm:$0xff]  ;;  %v3412_v52 = vld [vmem:[%s3297_s10 + $0x70] sm:$0xff] }
  0x53   : > { %2467 = vmatpush.msra.mxu3 %v307_v23  ;;  %472 = vmatpush.msra.mxu2 %v3356_v24  ;;  %v290_v48 = vld [vmem:[#allocation7 + $0x20] sm:$0xff]  ;;  %v271_v51 = vld [vmem:[%s3297_s10 + $0x8] sm:$0xff]  ;;  %v272_v53 = vld [vmem:[%s3297_s10 + $0x10] sm:$0xff] }
  0x54   : > { %406 = vmatpush.msra.mxu1 %v3359_v25  ;;  %342 = vmatpush.msra.mxu0 %v307_v23  ;;  %v3421_v54 = vld [vmem:[%s3297_s10 + $0x78] sm:$0xff]  ;;  %v274_v56 = vld [vmem:[%s3297_s10 + $0x20] sm:$0xff]  ;;  %v275_v57 = vld [vmem:[%s3297_s10 + $0x28] sm:$0xff] }
  0x55   : > { %2468 = vmatpush.msra.mxu3 %v304_v26  ;;  %473 = vmatpush.msra.mxu2 %v3362_v27  ;;  %v273_v55 = vld [vmem:[%s3297_s10 + $0x18] sm:$0xff]  ;;  %v276_v58 = vld [vmem:[%s3297_s10 + $0x30] sm:$0xff]  ;;  %v278_v60 = vld [vmem:[%s3297_s10 + $0x40] sm:$0xff] }
  0x56   : > { %407 = vmatpush.msra.mxu1 %v3365_v28  ;;  %343 = vmatpush.msra.mxu0 %v304_v26  ;;  %v277_v59 = vld [vmem:[%s3297_s10 + $0x38] sm:$0xff]  ;;  %v279_v61 = vld [vmem:[%s3297_s10 + $0x48] sm:$0xff]  ;;  %v280_v62 = vld [vmem:[%s3297_s10 + $0x50] sm:$0xff] }
  0x57   : > { %2469 = vmatpush.msra.mxu3 %v301_v29  ;;  %474 = vmatpush.msra.mxu2 %v3368_v30  ;;  %v281_v63 = vld [vmem:[%s3297_s10 + $0x58] sm:$0xff] }
  0x58   : > { %408 = vmatpush.msra.mxu1 %v3371_v31  ;;  %344 = vmatpush.msra.mxu0 %v301_v29 }
  0x59   : > { %2470 = vmatpush.msra.mxu3 %v298_v32  ;;  %475 = vmatpush.msra.mxu2 %v3374_v33 }
  0x5a   : > { %409 = vmatpush.msra.mxu1 %v3377_v34  ;;  %345 = vmatpush.msra.mxu0 %v298_v32 }
  0x5b   : > { %2471 = vmatpush.msra.mxu3 %v295_v35  ;;  %476 = vmatpush.msra.mxu2 %v3380_v36 }
  0x5c   : > { %410 = vmatpush.msra.mxu1 %v299_v37  ;;  %346 = vmatpush.msra.mxu0 %v295_v35 }
  0x5d   : > { %2472 = vmatpush.msra.mxu3 %v292_v38  ;;  %477 = vmatpush.msra.mxu2 %v3384_v39 }
  0x5e   : > { %411 = vmatpush.msra.mxu1 %v296_v40  ;;  %347 = vmatpush.msra.mxu0 %v292_v38 }
  0x5f   : > { %2473 = vmatpush.msra.mxu3 %v289_v41  ;;  %478 = vmatpush.msra.mxu2 %v3387_v42 }
  0x60   : > { %412 = vmatpush.msra.mxu1 %v293_v43  ;;  %348 = vmatpush.msra.mxu0 %v289_v41 }
  0x61   : > { %2474 = vmatpush.msra.mxu3 %v286_v44  ;;  %479 = vmatpush.msra.mxu2 %v3390_v45 }
  0x62   : > { %386 = vmatmul.f32.vlgmr.msra.gmra.mxu3 %v3394_v46  ;;  %480 = vmatmul.f32.vlgmr.msra.gmra.mxu2 %v270_v47 }
  0x63   : > { %2475 = vmatpush.msrb.mxu3 %v3320_v6  ;;  %413 = vmatpush.msra.mxu1 %v290_v48 }
  0x64   : > { %349 = vmatpush.msra.mxu0 %v286_v44 }
  0x65   : > { %2476 = vmatpush.msrb.mxu3 %v3323_v7  ;;  %414 = vmatpush.msra.mxu1 %v287_v49 }
  0x66   : > { %350 = vmatmul.f32.vlgmr.msra.gmra.mxu0 %v270_v47  ;;  %415 = vmatmul.f32.vlgmr.msra.gmra.mxu1 %v270_v47 }
  0x67   : > { %2477 = vmatpush.msrb.mxu3 %v3329_v10 }
  0x69   : > { %2478 = vmatpush.msrb.mxu3 %v3335_v13 }
  0x6a   : > { %389 = vmatmul.f32.gmra.mxu3 %v3403_v50  ;;  %483 = vmatmul.f32.gmra.mxu2 %v271_v51 }
  0x6b   : > { %2479 = vmatpush.msrb.mxu3 %v3341_v16 }
  0x6d   : > { %2480 = vmatpush.msrb.mxu3 %v3347_v19 }
  0x6e   : > { %353 = vmatmul.f32.gmra.mxu0 %v271_v51  ;;  %418 = vmatmul.f32.gmra.mxu1 %v271_v51 }
  0x6f   : > { %2481 = vmatpush.msrb.mxu3 %v3353_v22 }
  0x71   : > { %2482 = vmatpush.msrb.mxu3 %v3359_v25 }
  0x72   : > { %392 = vmatmul.f32.gmra.mxu3 %v3412_v52  ;;  %486 = vmatmul.f32.gmra.mxu2 %v272_v53 }
  0x73   : > { %2483 = vmatpush.msrb.mxu3 %v3365_v28 }
  0x75   : > { %2484 = vmatpush.msrb.mxu3 %v3371_v31 }
  0x76   : > { %356 = vmatmul.f32.gmra.mxu0 %v272_v53  ;;  %421 = vmatmul.f32.gmra.mxu1 %v272_v53 }
  0x77   : > { %2485 = vmatpush.msrb.mxu3 %v3377_v34 }
  0x79   : > { %2486 = vmatpush.msrb.mxu3 %v299_v37 }
  0x7a   : > { %395 = vmatmul.f32.gmra.mxu3 %v3421_v54  ;;  %489 = vmatmul.f32.gmra.mxu2 %v273_v55 }
  0x7b   : > { %2487 = vmatpush.msrb.mxu3 %v296_v40 }
  0x7d   : > { %2488 = vmatpush.msrb.mxu3 %v293_v43 }
  0x7e   : > { %359 = vmatmul.f32.gmra.mxu0 %v273_v55  ;;  %424 = vmatmul.f32.gmra.mxu1 %v273_v55 }
  0x7f   : > { %2489 = vmatpush.msrb.mxu3 %v290_v48 }
  0x81   : > { %2490 = vmatpush.msrb.mxu3 %v287_v49 }
  0x82   : > { %451 = vmatmul.f32.vlgmr.msrb.gmra.mxu3 %v3394_v46  ;;  %492 = vmatmul.f32.gmra.mxu2 %v274_v56 }
  0x83   : > { %2491 = vmatpush.msra.mxu3 %v3313_v1 }
  0x85   : > { %2492 = vmatpush.msra.mxu3 %v3316_v3 }
  0x86   : > { %362 = vmatmul.f32.gmra.mxu0 %v274_v56  ;;  %427 = vmatmul.f32.gmra.mxu1 %v274_v56 }
  0x87   : > { %2493 = vmatpush.msra.mxu3 %v3318_v5 }
  0x89   : > { %2494 = vmatpush.msra.mxu3 %v3326_v9 }
  0x8a   : > { %454 = vmatmul.f32.gmra.mxu3 %v3403_v50  ;;  %495 = vmatmul.f32.gmra.mxu2 %v275_v57 }
  0x8b   : > { %2495 = vmatpush.msra.mxu3 %v3332_v12 }
  0x8d   : > { %2496 = vmatpush.msra.mxu3 %v3338_v15 }
  0x8e   : > { %365 = vmatmul.f32.gmra.mxu0 %v275_v57  ;;  %430 = vmatmul.f32.gmra.mxu1 %v275_v57 }
  0x8f   : > { %2497 = vmatpush.msra.mxu3 %v3344_v18 }
  0x91   : > { %2498 = vmatpush.msra.mxu3 %v3350_v21 }
  0x92   : > { %457 = vmatmul.f32.gmra.mxu3 %v3412_v52  ;;  %498 = vmatmul.f32.gmra.mxu2 %v276_v58 }
  0x93   : > { %2499 = vmatpush.msra.mxu3 %v3356_v24 }
  0x95   : > { %2500 = vmatpush.msra.mxu3 %v3362_v27 }
  0x96   : > { %368 = vmatmul.f32.gmra.mxu0 %v276_v58  ;;  %433 = vmatmul.f32.gmra.mxu1 %v276_v58 }
  0x97   : > { %2501 = vmatpush.msra.mxu3 %v3368_v30 }
  0x99   : > { %2502 = vmatpush.msra.mxu3 %v3374_v33 }
  0x9a   : > { %460 = vmatmul.f32.gmra.mxu3 %v3421_v54  ;;  %501 = vmatmul.f32.gmra.mxu2 %v277_v59 }
  0x9b   : > { %2503 = vmatpush.msra.mxu3 %v3380_v36 }
  0x9d   : > { %2504 = vmatpush.msra.mxu3 %v3384_v39 }
  0x9e   : > { %371 = vmatmul.f32.gmra.mxu0 %v277_v59  ;;  %436 = vmatmul.f32.gmra.mxu1 %v277_v59 }
  0x9f   : > { %2505 = vmatpush.msra.mxu3 %v3387_v42 }
  0xa1   : > { %2506 = vmatpush.msra.mxu3 %v3390_v45 }
  0xa2   : > { %504 = vmatmul.f32.gmra.mxu2 %v278_v60  ;;  %516 = vmatmul.f32.vlgmr.msra.gmra.mxu3 %v3394_v46 }
  0xa6   : > { %374 = vmatmul.f32.gmra.mxu0 %v278_v60  ;;  %439 = vmatmul.f32.gmra.mxu1 %v278_v60 }
  0xaa   : > { %507 = vmatmul.f32.gmra.mxu2 %v279_v61  ;;  %519 = vmatmul.f32.gmra.mxu3 %v3403_v50 }
  0xae   : > { %377 = vmatmul.f32.gmra.mxu0 %v279_v61  ;;  %442 = vmatmul.f32.gmra.mxu1 %v279_v61 }
  0xb2   : > { %510 = vmatmul.f32.gmra.mxu2 %v280_v62  ;;  %522 = vmatmul.f32.gmra.mxu3 %v3412_v52 }
  0xb6   : > { %380 = vmatmul.f32.gmra.mxu0 %v280_v62  ;;  %445 = vmatmul.f32.gmra.mxu1 %v280_v62 }
  0xba   : > { %513 = vmatmul.f32.gmra.mxu2 %v281_v63  ;;  %525 = vmatmul.f32.gmra.mxu3 %v3421_v54 }
  0xbe   : > { %383 = vmatmul.f32.gmra.mxu0 %v281_v63  ;;  %448 = vmatmul.f32.gmra.mxu1 %v281_v63 }
  0xe3   : > { %v351_v0 = vpop.f32.mrf.mxu0  ;;  %v416_v1 = vpop.f32.mrf.mxu1 }
  0xe4   : > { %529 = vst [vmem:[#allocation2] sm:$0xff] %v351_v0 }
  0xe5   : > { %v387_v2 = vpop.f32.mrf.mxu3  ;;  %530 = vst [vmem:[#allocation2 + $0x8] sm:$0xff] %v416_v1  ;;  %v481_v3 = vpop.f32.mrf.mxu2 }
  0xe6   : > { %565 = vst [vmem:[#allocation2 + $0x120] sm:$0xff] %v387_v2 }
  0xe7   : > { %531 = vst [vmem:[#allocation2 + $0x10] sm:$0xff] %v481_v3 }
  0xeb   : > { %v354_v4 = vpop.f32.mrf.mxu0  ;;  %v419_v5 = vpop.f32.mrf.mxu1 }
  0xec   : > { %532 = vst [vmem:[#allocation2 + $0x18] sm:$0xff] %v354_v4 }
  0xed   : > { %v390_v6 = vpop.f32.mrf.mxu3  ;;  %533 = vst [vmem:[#allocation2 + $0x20] sm:$0xff] %v419_v5  ;;  %v484_v7 = vpop.f32.mrf.mxu2 }
  0xee   : > { %568 = vst [vmem:[#allocation2 + $0x138] sm:$0xff] %v390_v6 }
  0xef   : > { %534 = vst [vmem:[#allocation2 + $0x28] sm:$0xff] %v484_v7 }
  0xf3   : > { %v357_v8 = vpop.f32.mrf.mxu0  ;;  %v422_v9 = vpop.f32.mrf.mxu1 }
  0xf4   : > { %535 = vst [vmem:[#allocation2 + $0x30] sm:$0xff] %v357_v8 }
  0xf5   : > { %v393_v10 = vpop.f32.mrf.mxu3  ;;  %536 = vst [vmem:[#allocation2 + $0x38] sm:$0xff] %v422_v9  ;;  %v487_v11 = vpop.f32.mrf.mxu2 }
  0xf6   : > { %571 = vst [vmem:[#allocation2 + $0x150] sm:$0xff] %v393_v10 }
  0xf7   : > { %537 = vst [vmem:[#allocation2 + $0x40] sm:$0xff] %v487_v11 }
  0xfb   : > { %v360_v12 = vpop.f32.mrf.mxu0  ;;  %v425_v13 = vpop.f32.mrf.mxu1 }
  0xfc   : > { %538 = vst [vmem:[#allocation2 + $0x48] sm:$0xff] %v360_v12 }
  0xfd   : > { %v396_v14 = vpop.f32.mrf.mxu3  ;;  %539 = vst [vmem:[#allocation2 + $0x50] sm:$0xff] %v425_v13  ;;  %v490_v15 = vpop.f32.mrf.mxu2 }
  0xfe   : > { %574 = vst [vmem:[#allocation2 + $0x168] sm:$0xff] %v396_v14 }
  0xff   : > { %540 = vst [vmem:[#allocation2 + $0x58] sm:$0xff] %v490_v15 }
 0x103   : > { %v363_v16 = vpop.f32.mrf.mxu0  ;;  %v428_v17 = vpop.f32.mrf.mxu1 }
 0x104   : > { %541 = vst [vmem:[#allocation2 + $0x60] sm:$0xff] %v363_v16 }
 0x105   : > { %542 = vst [vmem:[#allocation2 + $0x68] sm:$0xff] %v428_v17  ;;  %v452_v18 = vpop.f32.mrf.mxu3  ;;  %v493_v19 = vpop.f32.mrf.mxu2 }
 0x106   : > { %566 = vst [vmem:[#allocation2 + $0x128] sm:$0xff] %v452_v18 }
 0x107   : > { %543 = vst [vmem:[#allocation2 + $0x70] sm:$0xff] %v493_v19 }
 0x10b   : > { %v366_v20 = vpop.f32.mrf.mxu0  ;;  %v431_v21 = vpop.f32.mrf.mxu1 }
 0x10c   : > { %544 = vst [vmem:[#allocation2 + $0x78] sm:$0xff] %v366_v20 }
 0x10d   : > { %545 = vst [vmem:[#allocation2 + $0x80] sm:$0xff] %v431_v21  ;;  %v455_v22 = vpop.f32.mrf.mxu3  ;;  %v496_v23 = vpop.f32.mrf.mxu2 }
 0x10e   : > { %569 = vst [vmem:[#allocation2 + $0x140] sm:$0xff] %v455_v22 }
 0x10f   : > { %546 = vst [vmem:[#allocation2 + $0x88] sm:$0xff] %v496_v23 }
 0x113   : > { %v369_v24 = vpop.f32.mrf.mxu0  ;;  %v434_v25 = vpop.f32.mrf.mxu1 }
 0x114   : > { %547 = vst [vmem:[#allocation2 + $0x90] sm:$0xff] %v369_v24 }
 0x115   : > { %548 = vst [vmem:[#allocation2 + $0x98] sm:$0xff] %v434_v25  ;;  %v458_v26 = vpop.f32.mrf.mxu3  ;;  %v499_v27 = vpop.f32.mrf.mxu2 }
 0x116   : > { %572 = vst [vmem:[#allocation2 + $0x158] sm:$0xff] %v458_v26 }
 0x117   : > { %549 = vst [vmem:[#allocation2 + $0xa0] sm:$0xff] %v499_v27 }
 0x11b   : > { %v372_v28 = vpop.f32.mrf.mxu0  ;;  %v437_v29 = vpop.f32.mrf.mxu1 }
 0x11c   : > { %550 = vst [vmem:[#allocation2 + $0xa8] sm:$0xff] %v372_v28 }
 0x11d   : > { %551 = vst [vmem:[#allocation2 + $0xb0] sm:$0xff] %v437_v29  ;;  %v461_v30 = vpop.f32.mrf.mxu3  ;;  %v502_v31 = vpop.f32.mrf.mxu2 }
 0x11e   : > { %575 = vst [vmem:[#allocation2 + $0x170] sm:$0xff] %v461_v30 }
 0x11f   : > { %552 = vst [vmem:[#allocation2 + $0xb8] sm:$0xff] %v502_v31 }
 0x123   : > { %v375_v32 = vpop.f32.mrf.mxu0  ;;  %v440_v33 = vpop.f32.mrf.mxu1 }
 0x124   : > { %553 = vst [vmem:[#allocation2 + $0xc0] sm:$0xff] %v375_v32 }
 0x125   : > { %554 = vst [vmem:[#allocation2 + $0xc8] sm:$0xff] %v440_v33  ;;  %v505_v34 = vpop.f32.mrf.mxu2  ;;  %v517_v35 = vpop.f32.mrf.mxu3 }
 0x126   : > { %555 = vst [vmem:[#allocation2 + $0xd0] sm:$0xff] %v505_v34 }
 0x127   : > { %567 = vst [vmem:[#allocation2 + $0x130] sm:$0xff] %v517_v35 }
 0x12b   : > { %v378_v36 = vpop.f32.mrf.mxu0  ;;  %v443_v37 = vpop.f32.mrf.mxu1 }
 0x12c   : > { %556 = vst [vmem:[#allocation2 + $0xd8] sm:$0xff] %v378_v36 }
 0x12d   : > { %557 = vst [vmem:[#allocation2 + $0xe0] sm:$0xff] %v443_v37  ;;  %v508_v38 = vpop.f32.mrf.mxu2  ;;  %v520_v39 = vpop.f32.mrf.mxu3 }
 0x12e   : > { %558 = vst [vmem:[#allocation2 + $0xe8] sm:$0xff] %v508_v38 }
 0x12f   : > { %570 = vst [vmem:[#allocation2 + $0x148] sm:$0xff] %v520_v39 }
 0x133   : > { %v381_v40 = vpop.f32.mrf.mxu0  ;;  %v446_v41 = vpop.f32.mrf.mxu1 }
 0x134   : > { %559 = vst [vmem:[#allocation2 + $0xf0] sm:$0xff] %v381_v40 }
 0x135   : > { %560 = vst [vmem:[#allocation2 + $0xf8] sm:$0xff] %v446_v41  ;;  %v511_v42 = vpop.f32.mrf.mxu2  ;;  %v523_v43 = vpop.f32.mrf.mxu3 }
 0x136   : > { %561 = vst [vmem:[#allocation2 + $0x100] sm:$0xff] %v511_v42 }
 0x137   : > { %573 = vst [vmem:[#allocation2 + $0x160] sm:$0xff] %v523_v43 }
 0x13b   : > { %v384_v44 = vpop.f32.mrf.mxu0  ;;  %v449_v45 = vpop.f32.mrf.mxu1 }
 0x13c   : > { %562 = vst [vmem:[#allocation2 + $0x108] sm:$0xff] %v384_v44 }
 0x13d   : > { %563 = vst [vmem:[#allocation2 + $0x110] sm:$0xff] %v449_v45  ;;  %v514_v46 = vpop.f32.mrf.mxu2  ;;  %v526_v47 = vpop.f32.mrf.mxu3 }
 0x13e   : > { %564 = vst [vmem:[#allocation2 + $0x118] sm:$0xff] %v514_v46 }
 0x13f   : > { %576 = vst [vmem:[#allocation2 + $0x178] sm:$0xff] %v526_v47 }
 0x140 PF: > { %v3457_v48 = vld [vmem:[#allocation2 + $0x170] sm:$0xff]  ;;  %vm659_vm0 = vcmask 261120   ;;  %v3459_v49 = vld [vmem:[#allocation2 + $0x140] sm:$0xff]  ;;  %s3128_s28 = smov 96   ;;  %v3467_v51 = vld [vmem:[#allocation2 + $0x158] sm:$0xff]  ;;  %s2353_s29 = sshll.u32 %s3104_s21, 6 }
 0x141   : > { %996 = vrot.lane.b32.xlu0 %v3457_v48, %s3128_s28  ;;  %2355 = vmatpush.xpose.msk.msra.mxu0 %vm659_vm0, %v3457_v48  ;;  %v3479_v52 = vld [vmem:[#allocation2 + $0x128] sm:$0xff]  ;;  %v3481_v53 = vld [vmem:[#allocation2 + $0xf8] sm:$0xff]  ;;  %v3489_v54 = vld [vmem:[#allocation2 + $0xe0] sm:$0xff]  ;;  %s606_s6 = sshra.s32 %s2353_s29, 3  ;;  %s3129_s18 = smov 64   ;;  %vm1304_vm9 = vcmask 523520  }
 0x142   : > { %992 = vrot.lane.b32.xlu1 %v3459_v49, %s3128_s28  ;;  %v3495_v55 = vld [vmem:[#allocation2 + $0xc8] sm:$0xff]  ;;  %v3497_v56 = vld [vmem:[#allocation2 + $0xb0] sm:$0xff]  ;;  %v3505_v57 = vld [vmem:[#allocation2 + $0x98] sm:$0xff]  ;;  %s2458_s13 = smul.u32 24, %s606_s6  ;;  %s3130_s14 = smov 32   ;;  %vm1715_vm10 = vcmask 785920  }
 0x143   : > { %v3512_v58 = vld [vmem:[#allocation2 + $0x80] sm:$0xff]  ;;  %v3514_v59 = vld [vmem:[#allocation2 + $0x68] sm:$0xff]  ;;  %v3524_v60 = vld [vmem:[#allocation2 + $0x50] sm:$0xff]  ;;  %vm2126_vm11 = vcmask 1048320   ;;  %s2452_s7 = sshll.u32 %s3104_s21, 3  ;;  %s2453_s11 = sshll.u32 %s3108_s22, 4 }
 0x144   : > { %v3465_v50 = vld [vmem:[#allocation2 + $0x110] sm:$0xff]  ;;  %v3530_v62 = vld [vmem:[#allocation2 + $0x38] sm:$0xff]  ;;  %v3532_v63 = vld [vmem:[#allocation2 + $0x20] sm:$0xff]  ;;  %s3538_s9 = scalar_lea.vmem [#allocation2], %s2458_s13  ;;  %s2224_s23 = sadd.s32 %s2453_s11, %s2452_s7 }
 0x145   : > { %988 = vrot.lane.b32.xlu2 %v3465_v50, %s3128_s28  ;;  %2356 = vmatpush.xpose.msk.msra.mxu0 %vm659_vm0, %v3467_v51  ;;  %v932_v0 = vld [vmem:[#allocation2 + $0x160] sm:$0xff]  ;;  %v3544_v3 = vld [vmem:[#allocation2 + $0x8] sm:$0xff]  ;;  %v930_v17 = vld [vmem:[#allocation2 + $0x130] sm:$0xff]  ;;  %s2454_s12 = sshll.u32 %s2224_s23, 3  ;;  %s4460_s15 = sld [smem:[#allocation22_spill]] }
 0x146   : > { %v933_v61 = vld [vmem:[#allocation2 + $0x178] sm:$0xff]  ;;  %v611_v1 = vld [vmem:[%s3538_s9] sm:$0xff]  ;;  %v613_v6 = vld [vmem:[%s3538_s9 + $0x30] sm:$0xff]  ;;  %s2227_s6 = sshll.u32 %s3310_s30, 4  ;;  %s2228_s6 = int_to_ptr.vmem [resolvable:$true] %s2227_s6 }
 0x147   : > { %853 = vmatpush.msra.mxu1 %v933_v61  ;;  %v612_v2 = vld [vmem:[%s3538_s9 + $0x18] sm:$0xff]  ;;  %v3546_v4 = vmul.f32 0.17677669, %v611_v1  ;;  %v614_v7 = vld [vmem:[%s3538_s9 + $0x48] sm:$0xff]  ;;  %v3562_v8 = vmul.f32 0.17677669, %v613_v6  ;;  %v2655_v21 = vpack.i.bf16 %v932_v0, %v933_v61 }
 0x148   : > { %v3548_v5 = vmul.f32 0.17677669, %v612_v2  ;;  %v3564_v9 = vmul.f32 0.17677669, %v614_v7  ;;  %v615_v10 = vld [vmem:[%s3538_s9 + $0x60] sm:$0xff]  ;;  %v616_v11 = vld [vmem:[%s3538_s9 + $0x78] sm:$0xff] }
 0x149   : > { %994 = vrot.lane.b32.xlu0 %v3467_v51, %s3128_s28  ;;  %2357 = vmatpush.xpose.msk.msra.mxu0 %vm659_vm0, %v3459_v49  ;;  %v3574_v12 = vmul.f32 0.17677669, %v615_v10  ;;  %v617_v13 = vld [vmem:[%s3538_s9 + $0x90] sm:$0xff]  ;;  %v3581_v14 = vmul.f32 0.17677669, %v616_v11  ;;  %v931_v16 = vld [vmem:[#allocation2 + $0x148] sm:$0xff] }
 0x14a   : > { %990 = vrot.lane.b32.xlu1 %v3479_v52, %s3128_s28  ;;  %854 = vmatpush.msra.mxu1 %v932_v0  ;;  %v3583_v15 = vmul.f32 0.17677669, %v617_v13  ;;  %v618_v18 = vld [vmem:[%s3538_s9 + $0xa8] sm:$0xff]  ;;  %v929_v20 = vld [vmem:[#allocation2 + $0x118] sm:$0xff]  ;;  %v928_v22 = vld [vmem:[#allocation2 + $0x100] sm:$0xff]  ;;  %v2660_v23 = vpack.i.bf16 %v930_v17, %v931_v16  ;;  %s2213_s9 = scalar_lea.sflag [#allocation6], %s262_s4 }
 0x14b   : > { %v3592_v19 = vmul.f32 0.17677669, %v618_v18  ;;  %v924_v24 = vld [vmem:[#allocation2 + $0xa0] sm:$0xff]  ;;  %v925_v25 = vld [vmem:[#allocation2 + $0xb8] sm:$0xff]  ;;  %v927_v27 = vld [vmem:[#allocation2 + $0xe8] sm:$0xff]  ;;  %v2665_v29 = vpack.i.bf16 %v928_v22, %v929_v20  ;;  %v578_v18 = vlaneseq }
 0x14c   : > { %855 = vmatpush.msra.mxu1 %v931_v16  ;;  %v2675_v26 = vpack.i.bf16 %v924_v24, %v925_v25  ;;  %v926_v28 = vld [vmem:[#allocation2 + $0xd0] sm:$0xff]  ;;  %v923_v31 = vld [vmem:[#allocation2 + $0x88] sm:$0xff]  ;;  %v920_v39 = vld [vmem:[#allocation2 + $0x40] sm:$0xff] }
 0x14d   : > { %986 = vrot.lane.b32.xlu2 %v3481_v53, %s3128_s28  ;;  %2358 = vmatpush.xpose.msk.msra.mxu0 %vm659_vm0, %v3479_v52  ;;  %v922_v30 = vld [vmem:[#allocation2 + $0x70] sm:$0xff]  ;;  %v919_v33 = vld [vmem:[#allocation2 + $0x28] sm:$0xff]  ;;  %v2670_v38 = vpack.i.bf16 %v926_v28, %v927_v27  ;;  %v921_v40 = vld [vmem:[#allocation2 + $0x58] sm:$0xff] }
 0x14e   : > { %856 = vmatpush.msra.mxu1 %v930_v17  ;;  %v918_v32 = vld [vmem:[#allocation2 + $0x10] sm:$0xff]  ;;  %v2680_v34 = vpack.i.bf16 %v922_v30, %v923_v31  ;;  %v2685_v41 = vpack.i.bf16 %v920_v39, %v921_v40 }
 0x14f   : > { %v2690_v36 = vpack.i.bf16 %v918_v32, %v919_v33 }
 0x150   : > { %857 = vmatpush.msra.mxu1 %v929_v20 }
 0x151   : > { %984 = vrot.lane.b32.xlu0 %v3489_v54, %s3128_s28  ;;  %2359 = vmatpush.xpose.msk.msra.mxu0 %vm659_vm0, %v3465_v50 }
 0x152   : > { %982 = vrot.lane.b32.xlu1 %v3495_v55, %s3128_s28  ;;  %858 = vmatpush.msra.mxu1 %v928_v22  ;;  %v3680_v22 = vstv %s2353_s29  ;;  %s2226_s29 = scalar_lea.hbm %s4460_s15, %s2454_s12 }
 0x153   : > { %s2229_s13 = sshll.u32 %s2226_s29, 4  ;;  %s2230_s13 = int_to_ptr.hbm [resolvable:$true] %s2229_s13 }
 0x154   : > { %859 = vmatpush.msra.mxu1 %v927_v27 }
 0x155   : > { %980 = vrot.lane.b32.xlu2 %v3497_v56, %s3128_s28  ;;  %2360 = vmatpush.xpose.msk.msra.mxu0 %vm659_vm0, %v3481_v53 }
 0x156   : > { %860 = vmatpush.msra.mxu1 %v926_v28  ;;  %v3687_v28 = vand.u32 127, %v578_v18 }
 0x158   : > { %861 = vmatpush.msra.mxu1 %v925_v25 }
 0x159   : > { %978 = vrot.lane.b32.xlu0 %v3505_v57, %s3128_s28  ;;  %2361 = vmatpush.xpose.msk.msra.mxu0 %vm659_vm0, %v3489_v54 }
 0x15a   : > { %976 = vrot.lane.b32.xlu1 %v3512_v58, %s3128_s28  ;;  %862 = vmatpush.msra.mxu1 %v924_v24 }
 0x15c   : > { %863 = vmatpush.msra.mxu1 %v923_v31 }
 0x15d   : > { %974 = vrot.lane.b32.xlu2 %v3514_v59, %s3128_s28  ;;  %2362 = vmatpush.xpose.msk.msra.mxu0 %vm659_vm0, %v3495_v55 }
 0x15e   : > { %864 = vmatpush.msra.mxu1 %v922_v30 }
 0x160   : > { %865 = vmatpush.msra.mxu1 %v921_v40 }
 0x161   : > { %972 = vrot.lane.b32.xlu0 %v3524_v60, %s3128_s28  ;;  %2363 = vmatpush.xpose.msk.msra.mxu0 %vm659_vm0, %v3497_v56 }
 0x162   : > { %970 = vrot.lane.b32.xlu1 %v3530_v62, %s3128_s28  ;;  %866 = vmatpush.msra.mxu1 %v920_v39 }
 0x164   : > { %867 = vmatpush.msra.mxu1 %v919_v33 }
 0x165   : > { %968 = vrot.lane.b32.xlu2 %v3532_v63, %s3128_s28  ;;  %2364 = vmatpush.xpose.msk.msra.mxu0 %vm659_vm0, %v3505_v57 }
 0x166   : > { %868 = vmatpush.msra.mxu1 %v918_v32 }
 0x169   : > { %966 = vrot.lane.b32.xlu0 %v3544_v3, %s3128_s28  ;;  %2365 = vmatpush.xpose.msk.msra.mxu0 %vm659_vm0, %v3512_v58 }
 0x16a   : > { %934 = vrot.lane.b32.xlu1 %v3546_v4, %s3128_s28 }
 0x16d   : > { %936 = vrot.lane.b32.xlu2 %v3548_v5, %s3128_s28  ;;  %2366 = vmatpush.xpose.msk.msra.mxu0 %vm659_vm0, %v3514_v59 }
 0x171   : > { %2367 = vmatpush.xpose.msk.msra.mxu0 %vm659_vm0, %v3524_v60  ;;  %938 = vrot.lane.b32.xlu0 %v3562_v8, %s3128_s28 }
 0x172   : > { %940 = vrot.lane.b32.xlu1 %v3564_v9, %s3128_s28 }
 0x175   : > { %942 = vrot.lane.b32.xlu2 %v3574_v12, %s3128_s28  ;;  %2368 = vmatpush.xpose.msk.msra.mxu0 %vm659_vm0, %v3530_v62 }
 0x179   : > { %2369 = vmatpush.xpose.msk.msra.mxu0 %vm659_vm0, %v3532_v63  ;;  %944 = vrot.lane.b32.xlu0 %v3581_v14, %s3128_s28 }
 0x17a   : > { %946 = vrot.lane.b32.xlu1 %v3583_v15, %s3128_s28 }
 0x17d   : > { %948 = vrot.lane.b32.xlu2 %v3592_v19, %s3128_s28  ;;  %2370 = vmatpush.xpose.msk.msra.mxu0 %vm659_vm0, %v3544_v3 }
 0x180   : > { %2371 = vmatmul.msk.f32.vlgmr.msra.gmra.mxu0 %vm659_vm0, %v3546_v4 }
 0x181   : > { %2656 = vrot.lane.b32.xlu0 %v2655_v21, %s3128_s28  ;;  %v3675_v21 = vshrl.u32 %v578_v18, 7 }
 0x182   : > { %2661 = vrot.lane.b32.xlu1 %v2660_v23, %s3128_s28 }
 0x183   : > { %v3685_v27 = vadd.s32 %v3680_v22, %v3675_v21  ;;  %v580_v32 = vadd.s32 8, %v3675_v21 }
 0x185   : > { %1407 = vrot.lane.b32.xlu2 %v3457_v48, %s3129_s18  ;;  %vm598_vm1 = vcmp.ge.s32.totalorder %v3685_v27, %v3687_v28  ;;  %v1337_v27 = vld [vmem:[#allocation2 + $0xd0] sm:$0xff] }
 0x188   : > { %2372 = vmatmul.msk.f32.gmra.mxu0 %vm659_vm0, %v3548_v5 }
 0x189   : > { %1818 = vrot.lane.b32.xlu0 %v3457_v48, %s3130_s14 }
 0x18a   : > { %2676 = vrot.lane.b32.xlu1 %v2675_v26, %s3128_s28 }
 0x18d   : > { %1401 = vrot.lane.b32.xlu2 %v3479_v52, %s3129_s18 }
 0x190   : > { %2373 = vmatmul.msk.f32.gmra.mxu0 %vm659_vm0, %v3562_v8 }
 0x191   : > { %2666 = vrot.lane.b32.xlu0 %v2665_v29, %s3128_s28 }
 0x192   : > { %1397 = vrot.lane.b32.xlu1 %v3481_v53, %s3129_s18 }
 0x195   : > { %1812 = vrot.lane.b32.xlu2 %v3479_v52, %s3130_s14 }
 0x198   : > { %2374 = vmatmul.msk.f32.gmra.mxu0 %vm659_vm0, %v3564_v9 }
 0x199   : > { %1405 = vrot.lane.b32.xlu0 %v3467_v51, %s3129_s18 }
 0x19a   : > { %1808 = vrot.lane.b32.xlu1 %v3481_v53, %s3130_s14 }
 0x19d   : > { %2681 = vrot.lane.b32.xlu2 %v2680_v34, %s3128_s28 }
 0x19f   : > { %v989_v35 = vpop.permute.xlu2 %988 }
 0x1a0   : > { %2375 = vmatmul.msk.f32.gmra.mxu0 %vm659_vm0, %v3574_v12 }
 0x1a1   : > { %1816 = vrot.lane.b32.xlu0 %v3467_v51, %s3130_s14 }
 0x1a2   : > { %2691 = vrot.lane.b32.xlu1 %v2690_v36, %s3128_s28 }
 0x1a5   : > { %1399 = vrot.lane.b32.xlu2 %v3465_v50, %s3129_s18 }
 0x1a7   : > { %v987_v37 = vpop.permute.xlu2 %986 }
 0x1a8   : > { %2376 = vmatmul.msk.f32.gmra.mxu0 %vm659_vm0, %v3581_v14 }
 0x1a9   : > { %2671 = vrot.lane.b32.xlu0 %v2670_v38, %s3128_s28 }
 0x1aa   : > { %1395 = vrot.lane.b32.xlu1 %v3489_v54, %s3129_s18 }
 0x1ad   : > { %2686 = vrot.lane.b32.xlu2 %v2685_v41, %s3128_s28 }
 0x1af   : > { %v981_v42 = vpop.permute.xlu2 %980 }
 0x1b0   : > { %2377 = vmatmul.msk.f32.gmra.mxu0 %vm659_vm0, %v3583_v15 }
 0x1b1   : > { %1403 = vrot.lane.b32.xlu0 %v3459_v49, %s3129_s18 }
 0x1b3   : > { %v997_v43 = vpop.permute.xlu0 %996 }
 0x1b4   : > { %2379 = vmatpush.xpose.msk.msra.mxu2 %vm659_vm0, %v997_v43  ;;  %v993_v44 = vpop.permute.xlu1 %992 }
 0x1b5   : > { %1806 = vrot.lane.b32.xlu2 %v3489_v54, %s3130_s14 }
 0x1b7   : > { %v975_v45 = vpop.permute.xlu2 %974 }
 0x1b8   : > { %2378 = vmatmul.msk.f32.gmra.mxu0 %vm659_vm0, %v3592_v19 }
 0x1b9   : > { %1814 = vrot.lane.b32.xlu0 %v3459_v49, %s3130_s14 }
 0x1bb   : > { %v995_v46 = vpop.permute.xlu0 %994 }
 0x1bc   : > { %2380 = vmatpush.xpose.msk.msra.mxu2 %vm659_vm0, %v995_v46  ;;  %v991_v47 = vpop.permute.xlu1 %990  ;;  %v582_v46 = vadd.s32 24, %v3675_v21 }
 0x1bf   : > { %v969_v48 = vpop.permute.xlu2 %968 }
 0x1c0   : > { %2381 = vmatpush.xpose.msk.msra.mxu2 %vm659_vm0, %v993_v44 }
 0x1c3   : > { %v985_v51 = vpop.permute.xlu0 %984 }
 0x1c4   : > { %2382 = vmatpush.xpose.msk.msra.mxu2 %vm659_vm0, %v991_v47  ;;  %v983_v52 = vpop.permute.xlu1 %982 }
 0x1c7   : > { %v937_v53 = vpop.permute.xlu2 %936 }
 0x1c8   : > { %2383 = vmatpush.xpose.msk.msra.mxu2 %vm659_vm0, %v989_v35  ;;  %v3703_v35 = vadd.s32 %v3680_v22, %v580_v32 }
 0x1ca   : > { %vm599_vm2 = vcmp.ge.s32.totalorder %v3703_v35, %v3687_v28 }
 0x1cb   : > { %v979_v54 = vpop.permute.xlu0 %978 }
 0x1cc   : > { %2384 = vmatpush.xpose.msk.msra.mxu2 %vm659_vm0, %v987_v37  ;;  %v977_v61 = vpop.permute.xlu1 %976  ;;  %v581_v37 = vadd.s32 16, %v3675_v21 }
 0x1ce   : > { %v3718_v43 = vadd.s32 %v3680_v22, %v581_v37 }
 0x1cf   : > { %v3654_v0 = vpop.permute.xlu2 %942 }
 0x1d0   : > { %2385 = vmatpush.xpose.msk.msra.mxu2 %vm659_vm0, %v985_v51  ;;  %vm600_vm3 = vcmp.ge.s32.totalorder %v3718_v43, %v3687_v28 }
 0x1d3   : > { %v973_v49 = vpop.permute.xlu0 %972 }
 0x1d4   : > { %2386 = vmatpush.xpose.msk.msra.mxu2 %vm659_vm0, %v983_v52  ;;  %v971_v1 = vpop.permute.xlu1 %970  ;;  %v3735_v52 = vadd.s32 %v3680_v22, %v582_v46 }
 0x1d6   : > { %vm601_vm4 = vcmp.ge.s32.totalorder %v3735_v52, %v3687_v28 }
 0x1d7   : > { %v3658_v2 = vpop.permute.xlu2 %948 }
 0x1d8   : > { %2387 = vmatpush.xpose.msk.msra.mxu2 %vm659_vm0, %v981_v42 }
 0x1db   : > { %v967_v6 = vpop.permute.xlu0 %966 }
 0x1dc   : > { %2388 = vmatpush.xpose.msk.msra.mxu2 %vm659_vm0, %v979_v54  ;;  %v935_v7 = vpop.permute.xlu1 %934 }
 0x1df   : > { %v3662_v10 = vpop.permute.xlu2 %1407 }
 0x1e0   : > { %2403 = vmatpush.xpose.msk.msrb.mxu1 %vm659_vm0, %v3662_v10  ;;  %2389 = vmatpush.xpose.msk.msra.mxu2 %vm659_vm0, %v977_v61  ;;  %v583_v61 = vadd.s32 32, %v3675_v21 }
 0x1e3   : > { %v939_v11 = vpop.permute.xlu0 %938 }
 0x1e4   : > { %2390 = vmatpush.xpose.msk.msra.mxu2 %vm659_vm0, %v975_v45  ;;  %v941_v13 = vpop.permute.xlu1 %940 }
 0x1e7   : > { %v3691_v31 = vpop.permute.xlu2 %1401 }
 0x1e8   : > { %2391 = vmatpush.xpose.msk.msra.mxu2 %vm659_vm0, %v973_v49 }
 0x1eb   : > { %v3669_v16 = vpop.permute.xlu0 %944 }
 0x1ec   : > { %2392 = vmatpush.xpose.msk.msra.mxu2 %vm659_vm0, %v971_v1  ;;  %v3672_v17 = vpop.permute.xlu1 %946 }
 0x1ef   : > { %v3708_v41 = vpop.permute.xlu2 %1812 }
 0x1f0   : > { %2393 = vmatpush.xpose.msk.msra.mxu2 %vm659_vm0, %v969_v48 }
 0x1f3   : > { %v2657_v20 = vpop.permute.xlu0 %2656 }
 0x1f4   : > { %2394 = vmatpush.xpose.msk.msra.mxu2 %vm659_vm0, %v967_v6  ;;  %v2658_v23 = vunpack.i.l.bf16 %v2657_v20  ;;  %v2659_v24 = vunpack.i.h.bf16 %v2657_v20  ;;  %v2662_v25 = vpop.permute.xlu1 %2661 }
 0x1f5   : > { %v2663_v26 = vunpack.i.l.bf16 %v2662_v25  ;;  %v2664_v29 = vunpack.i.h.bf16 %v2662_v25 }
 0x1f6   : > { %1231 = vmatpush.msra.mxu3 %v2658_v23 }
 0x1f7   : > { %2395 = vmatmul.msk.f32.vlgmr.msra.gmra.mxu2 %vm659_vm0, %v935_v7  ;;  %v2682_v51 = vpop.permute.xlu2 %2681 }
 0x1f8   : > { %1232 = vmatpush.msra.mxu3 %v2659_v24  ;;  %v2683_v25 = vunpack.i.l.bf16 %v2682_v51  ;;  %v2684_v32 = vunpack.i.h.bf16 %v2682_v51 }
 0x1fa   : > { %1233 = vmatpush.msra.mxu3 %v2663_v26 }
 0x1fb   : > { %v1819_v30 = vpop.permute.xlu0 %1818 }
 0x1fc   : > { %1234 = vmatpush.msra.mxu3 %v2664_v29  ;;  %2427 = vmatpush.xpose.msk.msrb.mxu0 %vm659_vm0, %v1819_v30  ;;  %v2677_v44 = vpop.permute.xlu1 %2676  ;;  %v585_v30 = vadd.s32 48, %v3675_v21 }
 0x1fd   : > { %v749_v33 = vpop.f32.mrf.mxu0  ;;  %v2678_v23 = vunpack.i.l.bf16 %v2677_v44  ;;  %v2679_v24 = vunpack.i.h.bf16 %v2677_v44 }
 0x1fe   : > { %v3698_v34 = vsel %vm598_vm1, %v749_v33, -1e+30  ;;  %v3777_v37 = vadd.s32 %v3680_v22, %v585_v30 }
 0x1ff   : > { %2396 = vmatmul.msk.f32.gmra.mxu2 %vm659_vm0, %v937_v53  ;;  %781 = vmax.xlane.f32.xlu0 %v3698_v34  ;;  %v1400_v6 = vpop.permute.xlu2 %1399 }
 0x200   : > { %vm604_vm6 = vcmp.ge.s32.totalorder %v3777_v37, %v3687_v28 }
 0x203   : > { %v2667_v36 = vpop.permute.xlu0 %2666 }
 0x204   : > { %v2668_v38 = vunpack.i.l.bf16 %v2667_v36  ;;  %v2669_v39 = vunpack.i.h.bf16 %v2667_v36  ;;  %v3741_v54 = vpop.permute.xlu1 %1397 }
 0x205   : > { %v752_v40 = vpop.f32.mrf.mxu0 }
 0x206   : > { %v3713_v42 = vsel %vm599_vm2, %v752_v40, -1e+30  ;;  %1235 = vmatpush.msra.mxu3 %v2668_v38  ;;  %v586_v40 = vadd.s32 56, %v3675_v21 }
 0x207   : > { %2397 = vmatmul.msk.f32.gmra.mxu2 %vm659_vm0, %v939_v11  ;;  %783 = vmax.xlane.f32.xlu1 %v3713_v42  ;;  %v2687_v26 = vpop.permute.xlu2 %2686 }
 0x208   : > { %1236 = vmatpush.msra.mxu3 %v2669_v39 }
 0x20b   : > { %v3720_v45 = vpop.permute.xlu0 %1405 }
 0x20c   : > { %2404 = vmatpush.xpose.msk.msrb.mxu1 %vm659_vm0, %v3720_v45  ;;  %v3760_v20 = vpop.permute.xlu1 %1808 }
 0x20d   : > { %v755_v47 = vpop.f32.mrf.mxu0 }
 0x20e   : > { %v3730_v48 = vsel %vm600_vm3, %v755_v47, -1e+30  ;;  %v3795_v47 = vadd.s32 %v3680_v22, %v586_v40 }
 0x20f   : > { %2398 = vmatmul.msk.f32.gmra.mxu2 %vm659_vm0, %v941_v13  ;;  %785 = vmax.xlane.f32.xlu2 %v3730_v48 }
 0x210   : > { %vm605_vm7 = vcmp.ge.s32.totalorder %v3795_v47, %v3687_v28 }
 0x213   : > { %v1817_v53 = vpop.permute.xlu0 %1816  ;;  %1810 = vrot.lane.b32.xlu0 %v3465_v50, %s3130_s14  ;;  %v3754_v50 = vadd.s32 %v3680_v22, %v583_v61 }
 0x214   : > { %2428 = vmatpush.xpose.msk.msrb.mxu0 %vm659_vm0, %v1817_v53  ;;  %v2692_v36 = vpop.permute.xlu1 %2691 }
 0x215   : > { %v758_v49 = vpop.f32.mrf.mxu0  ;;  %vm602_vm5 = vcmp.ge.s32.totalorder %v3754_v50, %v3687_v28  ;;  %v2693_v38 = vunpack.i.l.bf16 %v2692_v36  ;;  %v2694_v44 = vunpack.i.h.bf16 %v2692_v36  ;;  %v1742_v50 = vld [vmem:[#allocation2 + $0x40] sm:$0xff] }
 0x216   : > { %v3748_v1 = vsel %vm601_vm4, %v758_v49, -1e+30 }
 0x217   : > { %2399 = vmatmul.msk.f32.gmra.mxu2 %vm659_vm0, %v3654_v0  ;;  %787 = vmax.xlane.f32.xlu2 %v3748_v1 }
 0x21b   : > { %v2672_v7 = vpop.permute.xlu0 %2671  ;;  %1393 = vrot.lane.b32.xlu0 %v3495_v55, %s3129_s18 }
 0x21c   : > { %v2673_v11 = vunpack.i.l.bf16 %v2672_v7  ;;  %v2674_v13 = vunpack.i.h.bf16 %v2672_v7 }
 0x21d   : > { %v761_v18 = vpop.f32.mrf.mxu0 }
 0x21e   : > { %1237 = vmatpush.msra.mxu3 %v2673_v11  ;;  %v3765_v0 = vsel %vm602_vm5, %v761_v18, -1e+30 }
 0x21f   : > { %2400 = vmatmul.msk.f32.gmra.mxu2 %vm659_vm0, %v3669_v16  ;;  %789 = vmax.xlane.f32.xlu1 %v3765_v0  ;;  %v2688_v16 = vunpack.i.l.bf16 %v2687_v26 }
 0x220   : > { %1238 = vmatpush.msra.mxu3 %v2674_v13 }
 0x222   : > { %1239 = vmatpush.msra.mxu3 %v2678_v23 }
 0x223   : > { %1804 = vrot.lane.b32.xlu0 %v3495_v55, %s3130_s14  ;;  %v1404_v29 = vpop.permute.xlu0 %1403  ;;  %v2689_v55 = vunpack.i.h.bf16 %v2687_v26 }
 0x224   : > { %1240 = vmatpush.msra.mxu3 %v2679_v24  ;;  %2405 = vmatpush.xpose.msk.msrb.mxu1 %vm659_vm0, %v1404_v29 }
 0x225   : > { %v764_v33 = vpop.f32.mrf.mxu0 }
 0x226   : > { %1241 = vmatpush.msra.mxu3 %v2683_v25 }
 0x227   : > { %2401 = vmatmul.msk.f32.gmra.mxu2 %vm659_vm0, %v3672_v17 }
 0x228   : > { %1242 = vmatpush.msra.mxu3 %v2684_v32  ;;  %2406 = vmatpush.xpose.msk.msrb.mxu1 %vm659_vm0, %v3691_v31 }
 0x22a   : > { %1243 = vmatpush.msra.mxu3 %v2688_v16 }
 0x22b   : > { %v1815_v39 = vpop.permute.xlu0 %1814 }
 0x22c   : > { %1244 = vmatpush.msra.mxu3 %v2689_v55  ;;  %2429 = vmatpush.xpose.msk.msrb.mxu0 %vm659_vm0, %v1815_v39 }
 0x22d   : > { %v767_v17 = vpop.f32.mrf.mxu0  ;;  %2407 = vmatpush.xpose.msk.msrb.mxu1 %vm659_vm0, %v1400_v6 }
 0x22e   : > { %1245 = vmatpush.msra.mxu3 %v2693_v38  ;;  %v3789_v46 = vsel %vm604_vm6, %v767_v17, -1e+30 }
 0x22f   : > { %2402 = vmatmul.msk.f32.gmra.mxu2 %vm659_vm0, %v3658_v2  ;;  %793 = vmax.xlane.f32.xlu2 %v3789_v46 }
 0x230   : > { %1246 = vmatpush.msra.mxu3 %v2694_v44  ;;  %2430 = vmatpush.xpose.msk.msrb.mxu0 %vm659_vm0, %v3708_v41 }
 0x231   : > { %2408 = vmatpush.xpose.msk.msrb.mxu1 %vm659_vm0, %v3741_v54 }
 0x232   : > { %2507 = vmatpush.xpose.msk.msrb.mxu3 %vm659_vm0, %v3662_v10  ;;  %v584_v10 = vadd.s32 40, %v3675_v21 }
 0x234   : > { %v3819_v41 = vadd.s32 %v3680_v22, %v584_v10 }
 0x235   : > { %v770_v51 = vpop.f32.mrf.mxu0 }
 0x236   : > { %2508 = vmatpush.xpose.msk.msrb.mxu3 %vm659_vm0, %v3720_v45  ;;  %v3810_v2 = vsel %vm605_vm7, %v770_v51, -1e+30  ;;  %vm603_vm8 = vcmp.ge.s32.totalorder %v3819_v41, %v3687_v28 }
 0x237   : > { %795 = vmax.xlane.f32.xlu2 %v3810_v2  ;;  %v3828_v45 = vsel %vm603_vm8, %v764_v33, -1e+30 }
 0x23a   : > { %2509 = vmatpush.xpose.msk.msrb.mxu3 %vm659_vm0, %v1404_v29 }
 0x23e   : > { %2510 = vmatpush.xpose.msk.msrb.mxu3 %vm659_vm0, %v3691_v31  ;;  %v1396_v31 = vpop.permute.xlu1 %1395 }
 0x23f   : > { %2409 = vmatpush.xpose.msk.msrb.mxu1 %vm659_vm0, %v1396_v31 }
 0x242   : > { %2511 = vmatpush.xpose.msk.msrb.mxu3 %vm659_vm0, %v1400_v6 }
 0x246   : > { %2512 = vmatpush.xpose.msk.msrb.mxu3 %vm659_vm0, %v3741_v54  ;;  %v1807_v54 = vpop.permute.xlu2 %1806 }
 0x24a   : > { %2513 = vmatpush.xpose.msk.msrb.mxu3 %vm659_vm0, %v1396_v31 }
 0x24d   : > { %791 = vmax.xlane.f32.xlu0 %v3828_v45 }
 0x261   : > { %1391 = vrot.lane.b32.xlu0 %v3497_v56, %s3129_s18 }
 0x269   : > { %1802 = vrot.lane.b32.xlu0 %v3497_v56, %s3130_s14 }
 0x271   : > { %1389 = vrot.lane.b32.xlu0 %v3505_v57, %s3129_s18 }
 0x272   : > { %v782_v21 = vpop.xlane.xlu0 %781 }
 0x273   : > { %v797_v22 = vsub.f32 %v3698_v34, %v782_v21 }
 0x275   : > { %v805_v53 = vmul.f32 1.442695, %v797_v22 }
 0x277   : > { %2776 = vpow2.f32 %v805_v53 }
 0x27a   : > { %v1063_v61 = vpop.f32.mrf.mxu2  ;;  %v784_v49 = vpop.xlane.xlu1 %783 }
 0x27b   : > { %v798_v7 = vsub.f32 %v3713_v42, %v784_v49  ;;  %v3877_v38 = vsel %vm598_vm1, %v1063_v61, -1e+30 }
 0x27d   : > { %v3840_v6 = vpop.eup %2776  ;;  %v807_v11 = vmul.f32 1.442695, %v798_v7 }
 0x27e   : > { %821 = vadd.xlane.f32.xlu1 %v3840_v6 }
 0x27f   : > { %2778 = vpow2.f32 %v807_v11 }
 0x282   : > { %v1066_v13 = vpop.f32.mrf.mxu2  ;;  %v786_v56 = vpop.xlane.xlu2 %785 }
 0x283   : > { %v3847_v18 = vsel %vm599_vm2, %v1066_v13, -1e+30  ;;  %v799_v34 = vsub.f32 %v3730_v48, %v786_v56 }
 0x284   : > { %1097 = vmax.xlane.f32.xlu2 %v3847_v18 }
 0x285   : > { %v1811_v23 = vpop.permute.xlu0 %1810  ;;  %v809_v24 = vmul.f32 1.442695, %v799_v34  ;;  %v3854_v26 = vpop.eup %2778 }
 0x286   : > { %2431 = vmatpush.xpose.msk.msrb.mxu0 %vm659_vm0, %v1811_v23 }
 0x287   : > { %2780 = vpow2.f32 %v809_v24 }
 0x28a   : > { %v1069_v42 = vpop.f32.mrf.mxu2  ;;  %v788_v25 = vpop.xlane.xlu2 %787  ;;  %2432 = vmatpush.xpose.msk.msrb.mxu0 %vm659_vm0, %v3760_v20 }
 0x28b   : > { %v800_v29 = vsub.f32 %v3748_v1, %v788_v25  ;;  %v3860_v30 = vsel %vm600_vm3, %v1069_v42, -1e+30 }
 0x28c   : > { %823 = vadd.xlane.f32.xlu2 %v3854_v26  ;;  %1099 = vmax.xlane.f32.xlu1 %v3860_v30 }
 0x28d   : > { %v811_v48 = vmul.f32 1.442695, %v800_v29  ;;  %v1394_v32 = vpop.permute.xlu0 %1393  ;;  %v3867_v20 = vpop.eup %2780 }
 0x28e   : > { %2410 = vmatpush.xpose.msk.msrb.mxu1 %vm659_vm0, %v1394_v32  ;;  %2514 = vmatpush.xpose.msk.msrb.mxu3 %vm659_vm0, %v1394_v32 }
 0x28f   : > { %2782 = vpow2.f32 %v811_v48  ;;  %2433 = vmatpush.xpose.msk.msrb.mxu0 %vm659_vm0, %v1807_v54 }
 0x292   : > { %v1072_v1 = vpop.f32.mrf.mxu2  ;;  %v790_v36 = vpop.xlane.xlu1 %789 }
 0x293   : > { %v801_v40 = vsub.f32 %v3765_v0, %v790_v36  ;;  %v3890_v17 = vsel %vm601_vm4, %v1072_v1, -1e+30 }
 0x294   : > { %825 = vadd.xlane.f32.xlu2 %v3867_v20 }
 0x295   : > { %v3870_v33 = vpop.eup %2782  ;;  %v1805_v16 = vpop.permute.xlu0 %1804  ;;  %v813_v44 = vmul.f32 1.442695, %v801_v40 }
 0x296   : > { %827 = vadd.xlane.f32.xlu1 %v3870_v33  ;;  %2434 = vmatpush.xpose.msk.msrb.mxu0 %vm659_vm0, %v1805_v16 }
 0x297   : > { %2784 = vpow2.f32 %v813_v44 }
 0x29a   : > { %v1075_v55 = vpop.f32.mrf.mxu2 }
 0x29b   : > { %1095 = vmax.xlane.f32.xlu0 %v3877_v38  ;;  %v3883_v39 = vsel %vm602_vm5, %v1075_v55, -1e+30 }
 0x29d   : > { %v3899_v0 = vpop.eup %2784 }
 0x29e   : > { %1103 = vmax.xlane.f32.xlu1 %v3883_v39 }
 0x2a2   : > { %v1078_v51 = vpop.f32.mrf.mxu2  ;;  %v794_v54 = vpop.xlane.xlu2 %793 }
 0x2a3   : > { %1101 = vmax.xlane.f32.xlu0 %v3890_v17  ;;  %v3896_v10 = vsel %vm603_vm8, %v1078_v51, -1e+30  ;;  %v803_v49 = vsub.f32 %v3789_v46, %v794_v54 }
 0x2a5   : > { %v817_v7 = vmul.f32 1.442695, %v803_v49 }
 0x2a6   : > { %1105 = vmax.xlane.f32.xlu1 %v3896_v10 }
 0x2aa   : > { %v1081_v31 = vpop.f32.mrf.mxu2  ;;  %v796_v23 = vpop.xlane.xlu2 %795 }
 0x2ab   : > { %829 = vadd.xlane.f32.xlu0 %v3899_v0  ;;  %v3907_v21 = vsel %vm604_vm6, %v1081_v31, -1e+30  ;;  %v804_v24 = vsub.f32 %v3810_v2, %v796_v23 }
 0x2ac   : > { %1385 = vrot.lane.b32.xlu2 %v3514_v59, %s3129_s18 }
 0x2ad   : > { %v819_v42 = vmul.f32 1.442695, %v804_v24 }
 0x2b2   : > { %v1084_v13 = vpop.f32.mrf.mxu2 }
 0x2b3   : > { %1107 = vmax.xlane.f32.xlu0 %v3907_v21  ;;  %v3925_v46 = vsel %vm605_vm7, %v1084_v13, -1e+30 }
 0x2c0   : > { %v792_v22 = vpop.xlane.xlu0 %791 }
 0x2c1   : > { %v802_v53 = vsub.f32 %v3828_v45, %v792_v22 }
 0x2c3   : > { %v815_v61 = vmul.f32 1.442695, %v802_v53 }
 0x2c5   : > { %2786 = vpow2.f32 %v815_v61 }
 0x2c6   : > { %2788 = vpow2.f32 %v817_v7 }
 0x2c7   : > { %1800 = vrot.lane.b32.xlu0 %v3505_v57, %s3130_s14  ;;  %2790 = vpow2.f32 %v819_v42 }
 0x2cb   : > { %v3914_v11 = vpop.eup %2786 }
 0x2cc   : > { %831 = vadd.xlane.f32.xlu1 %v3914_v11  ;;  %v3919_v56 = vpop.eup %2788 }
 0x2cd   : > { %v3940_v29 = vpop.eup %2790 }
 0x2cf   : > { %1387 = vrot.lane.b32.xlu0 %v3512_v58, %s3129_s18 }
 0x2d3   : > { %v1392_v45 = vpop.permute.xlu0 %1391 }
 0x2d4   : > { %833 = vadd.xlane.f32.xlu1 %v3919_v56  ;;  %2411 = vmatpush.xpose.msk.msrb.mxu1 %vm659_vm0, %v1392_v45 }
 0x2d5   : > { %1109 = vmax.xlane.f32.xlu2 %v3925_v46  ;;  %2515 = vmatpush.xpose.msk.msrb.mxu3 %vm659_vm0, %v1392_v45 }
 0x2db   : > { %v1803_v57 = vpop.permute.xlu0 %1802 }
 0x2dc   : > { %2435 = vmatpush.xpose.msk.msrb.mxu0 %vm659_vm0, %v1803_v57 }
 0x2e3   : > { %v1390_v34 = vpop.permute.xlu0 %1389 }
 0x2e4   : > { %2412 = vmatpush.xpose.msk.msrb.mxu1 %vm659_vm0, %v1390_v34  ;;  %2516 = vmatpush.xpose.msk.msrb.mxu3 %vm659_vm0, %v1390_v34 }
 0x2ed   : > { %1379 = vrot.lane.b32.xlu2 %v3532_v63, %s3129_s18  ;;  %1798 = vrot.lane.b32.xlu1 %v3512_v58, %s3130_s14 }
 0x2f1   : > { %v822_v25 = vpop.xlane.xlu1 %821 }
 0x2f2   : > { %2792 = vrcp.f32 %v822_v25 }
 0x2f5   : > { %1796 = vrot.lane.b32.xlu1 %v3514_v59, %s3130_s14 }
 0x2f7   : > { %v1098_v48 = vpop.xlane.xlu2 %1097 }
 0x2f8   : > { %v2793_v32 = vpop.eup %2792  ;;  %v1112_v59 = vsub.f32 %v3847_v18, %v1098_v48 }
 0x2f9   : > { %835 = vadd.xlane.f32.xlu0 %v3940_v29  ;;  %v845_v2 = vmul.f32 %v2793_v32, %v3840_v6 }
 0x2fa   : > { %v1121_v6 = vmul.f32 1.442695, %v1112_v59 }
 0x2fb   : > { %869 = vmatmul.f32.vlgmr.msra.gmra.mxu1 %v845_v2 }
 0x2fd   : > { %1383 = vrot.lane.b32.xlu1 %v3524_v60, %s3129_s18 }
 0x2ff   : > { %v824_v1 = vpop.xlane.xlu2 %823  ;;  %v1100_v58 = vpop.xlane.xlu1 %1099 }
 0x300   : > { %2794 = vrcp.f32 %v824_v1  ;;  %v1113_v31 = vsub.f32 %v3860_v30, %v1100_v58 }
 0x305   : > { %1794 = vrot.lane.b32.xlu1 %v3524_v60, %s3130_s14 }
 0x306   : > { %v2795_v16 = vpop.eup %2794 }
 0x307   : > { %v826_v36 = vpop.xlane.xlu2 %825  ;;  %v846_v55 = vmul.f32 %v2795_v16, %v3854_v26  ;;  %v1123_v26 = vmul.f32 1.442695, %v1113_v31 }
 0x308   : > { %2796 = vrcp.f32 %v826_v36 }
 0x309   : > { %872 = vmatmul.f32.gmra.mxu1 %v846_v55  ;;  %v828_v40 = vpop.xlane.xlu1 %827 }
 0x30a   : > { %2798 = vrcp.f32 %v828_v40 }
 0x30b   : > { %2800 = vpow2.f32 %v1121_v6 }
 0x30d   : > { %1792 = vrot.lane.b32.xlu1 %v3530_v62, %s3130_s14 }
 0x30e   : > { %v2797_v44 = vpop.eup %2796  ;;  %v1096_v51 = vpop.xlane.xlu0 %1095 }
 0x30f   : > { %v1111_v60 = vsub.f32 %v3877_v38, %v1096_v51  ;;  %v847_v18 = vmul.f32 %v2797_v44, %v3867_v20 }
 0x310   : > { %v2799_v54 = vpop.eup %2798 }
 0x311   : > { %v1119_v22 = vmul.f32 1.442695, %v1111_v60  ;;  %875 = vmatmul.f32.gmra.mxu1 %v847_v18  ;;  %v1104_v53 = vpop.xlane.xlu1 %1103  ;;  %v3955_v61 = vpop.eup %2800  ;;  %v848_v30 = vmul.f32 %v2799_v54, %v3870_v33 }
 0x312   : > { %v1115_v49 = vsub.f32 %v3883_v39, %v1104_v53 }
 0x313   : > { %2802 = vpow2.f32 %v1119_v22 }
 0x314   : > { %2804 = vpow2.f32 %v1123_v26  ;;  %v1127_v20 = vmul.f32 1.442695, %v1115_v49 }
 0x316   : > { %1137 = vadd.xlane.f32.xlu2 %v3955_v61  ;;  %v1102_v7 = vpop.xlane.xlu0 %1101  ;;  %2806 = vpow2.f32 %v1127_v20 }
 0x317   : > { %v1114_v24 = vsub.f32 %v3890_v17, %v1102_v7 }
 0x319   : > { %v3960_v13 = vpop.eup %2802  ;;  %878 = vmatmul.f32.gmra.mxu1 %v848_v30  ;;  %v1125_v25 = vmul.f32 1.442695, %v1114_v24  ;;  %v1106_v48 = vpop.xlane.xlu1 %1105 }
 0x31a   : > { %1135 = vadd.xlane.f32.xlu0 %v3960_v13  ;;  %v3963_v38 = vpop.eup %2804  ;;  %v1116_v32 = vsub.f32 %v3896_v10, %v1106_v48 }
 0x31c   : > { %v3966_v39 = vpop.eup %2806 }
 0x31e   : > { %1139 = vadd.xlane.f32.xlu2 %v3963_v38  ;;  %v830_v45 = vpop.xlane.xlu0 %829 }
 0x31f   : > { %2808 = vrcp.f32 %v830_v45 }
 0x325   : > { %v2809_v57 = vpop.eup %2808 }
 0x326   : > { %1143 = vadd.xlane.f32.xlu2 %v3966_v39  ;;  %v1108_v34 = vpop.xlane.xlu0 %1107  ;;  %v849_v33 = vmul.f32 %v2809_v57, %v3899_v0  ;;  %v1129_v0 = vmul.f32 1.442695, %v1116_v32 }
 0x327   : > { %v1117_v23 = vsub.f32 %v3907_v21, %v1108_v34 }
 0x328   : > { %881 = vmatmul.f32.gmra.mxu1 %v849_v33 }
 0x329   : > { %v1131_v42 = vmul.f32 1.442695, %v1117_v23 }
 0x32b   : > { %2810 = vpow2.f32 %v1131_v42 }
 0x32c   : > { %2812 = vpow2.f32 %v1125_v25 }
 0x32d   : > { %2814 = vpow2.f32 %v1129_v0 }
 0x32e   : > { %1381 = vrot.lane.b32.xlu0 %v3530_v62, %s3129_s18 }
 0x331   : > { %v3975_v2 = vpop.eup %2810 }
 0x332   : > { %1147 = vadd.xlane.f32.xlu2 %v3975_v2  ;;  %v3978_v1 = vpop.eup %2812 }
 0x333   : > { %v3984_v62 = vpop.eup %2814 }
 0x336   : > { %1790 = vrot.lane.b32.xlu0 %v3532_v63, %s3130_s14  ;;  %v1386_v63 = vpop.permute.xlu2 %1385 }
 0x337   : > { %1141 = vadd.xlane.f32.xlu1 %v3978_v1 }
 0x339   : > { %v1801_v17 = vpop.permute.xlu0 %1800 }
 0x33a   : > { %2436 = vmatpush.xpose.msk.msrb.mxu0 %vm659_vm0, %v1801_v17 }
 0x33e   : > { %1377 = vrot.lane.b32.xlu0 %v3544_v3, %s3129_s18 }
 0x33f   : > { %v832_v10 = vpop.xlane.xlu1 %831  ;;  %1145 = vadd.xlane.f32.xlu1 %v3984_v62 }
 0x340   : > { %2816 = vrcp.f32 %v832_v10 }
 0x341   : > { %v1388_v21 = vpop.permute.xlu0 %1387 }
 0x342   : > { %2413 = vmatpush.xpose.msk.msrb.mxu1 %vm659_vm0, %v1388_v21  ;;  %2517 = vmatpush.xpose.msk.msrb.mxu3 %vm659_vm0, %v1388_v21 }
 0x346   : > { %v2817_v58 = vpop.eup %2816  ;;  %1788 = vrot.lane.b32.xlu0 %v3544_v3, %s3130_s14  ;;  %2414 = vmatpush.xpose.msk.msrb.mxu1 %vm659_vm0, %v1386_v63 }
 0x347   : > { %2518 = vmatpush.xpose.msk.msrb.mxu3 %vm659_vm0, %v1386_v63  ;;  %v834_v16 = vpop.xlane.xlu1 %833  ;;  %v850_v59 = vmul.f32 %v2817_v58, %v3914_v11 }
 0x348   : > { %2818 = vrcp.f32 %v834_v16  ;;  %v1110_v11 = vpop.xlane.xlu2 %1109 }
 0x349   : > { %884 = vmatmul.f32.gmra.mxu1 %v850_v59 }
 0x34a   : > { %1758 = vrot.lane.b32.xlu2 %v3548_v5, %s3130_s14 }
 0x34e   : > { %v2819_v36 = vpop.eup %2818  ;;  %1345 = vrot.lane.b32.xlu0 %v3546_v4, %s3129_s18 }
 0x34f   : > { %v851_v55 = vmul.f32 %v2819_v36, %v3919_v56 }
 0x350   : > { %v1380_v18 = vpop.permute.xlu2 %1379 }
 0x351   : > { %887 = vmatmul.f32.gmra.mxu1 %v851_v55 }
 0x352   : > { %1353 = vrot.lane.b32.xlu2 %v3574_v12, %s3129_s18 }
 0x358   : > { %1756 = vrot.lane.b32.xlu1 %v3546_v4, %s3130_s14  ;;  %v1118_v4 = vsub.f32 %v3925_v46, %v1110_v11 }
 0x35a   : > { %1766 = vrot.lane.b32.xlu2 %v3581_v14, %s3130_s14  ;;  %v1133_v6 = vmul.f32 1.442695, %v1118_v4 }
 0x35f   : > { %v1799_v3 = vpop.permute.xlu1 %1798 }
 0x360   : > { %1347 = vrot.lane.b32.xlu1 %v3548_v5, %s3129_s18  ;;  %2437 = vmatpush.xpose.msk.msrb.mxu0 %vm659_vm0, %v1799_v3 }
 0x362   : > { %1359 = vrot.lane.b32.xlu2 %v3592_v19, %s3129_s18 }
 0x367   : > { %v1797_v56 = vpop.permute.xlu1 %1796 }
 0x368   : > { %1349 = vrot.lane.b32.xlu1 %v3562_v8, %s3129_s18  ;;  %2438 = vmatpush.xpose.msk.msrb.mxu0 %vm659_vm0, %v1797_v56 }
 0x36c   : > { %v836_v40 = vpop.xlane.xlu0 %835 }
 0x36d   : > { %2820 = vrcp.f32 %v836_v40 }
 0x36e   : > { %2822 = vpow2.f32 %v1133_v6 }
 0x36f   : > { %v1384_v44 = vpop.permute.xlu1 %1383 }
 0x370   : > { %1760 = vrot.lane.b32.xlu1 %v3562_v8, %s3130_s14  ;;  %2415 = vmatpush.xpose.msk.msrb.mxu1 %vm659_vm0, %v1384_v44 }
 0x371   : > { %2519 = vmatpush.xpose.msk.msrb.mxu3 %vm659_vm0, %v1384_v44 }
 0x373   : > { %v2821_v5 = vpop.eup %2820 }
 0x374   : > { %v852_v51 = vmul.f32 %v2821_v5, %v3940_v29  ;;  %v4021_v31 = vpop.eup %2822 }
 0x376   : > { %890 = vmatmul.f32.gmra.mxu1 %v852_v51 }
 0x377   : > { %v1795_v60 = vpop.permute.xlu1 %1794 }
 0x378   : > { %v870_v46 = vpop.f32.mrf.mxu1  ;;  %1149 = vadd.xlane.f32.xlu0 %v4021_v31  ;;  %1762 = vrot.lane.b32.xlu1 %v3564_v9, %s3130_s14 }
 0x379   : > { %894 = vst.msk [vmem:[#allocation3] sm:$0xff] %vm659_vm0, %v870_v46  ;;  %2439 = vmatpush.xpose.msk.msrb.mxu0 %vm659_vm0, %v1795_v60 }
 0x37f   : > { %v1793_v8 = vpop.permute.xlu1 %1792 }
 0x380   : > { %1764 = vrot.lane.b32.xlu1 %v3574_v12, %s3130_s14  ;;  %2440 = vmatpush.xpose.msk.msrb.mxu0 %vm659_vm0, %v1793_v8 }
 0x386   : > { %v873_v29 = vpop.f32.mrf.mxu1 }
 0x387   : > { %895 = vst.msk [vmem:[#allocation3 + $0x8] sm:$0xff] %vm659_vm0, %v873_v29  ;;  %v1754_v29 = vld [vmem:[#allocation2 + $0x160] sm:$0xff] }
 0x388   : > { %1357 = vrot.lane.b32.xlu1 %v3583_v15, %s3129_s18 }
 0x389   : > { %v1138_v53 = vpop.xlane.xlu2 %1137 }
 0x38c   : > { %1351 = vrot.lane.b32.xlu0 %v3564_v9, %s3129_s18 }
 0x38d   : > { %v1136_v22 = vpop.xlane.xlu0 %1135 }
 0x38e   : > { %2824 = vrcp.f32 %v1136_v22  ;;  %v876_v26 = vpop.f32.mrf.mxu1 }
 0x38f   : > { %896 = vst.msk [vmem:[#allocation3 + $0x10] sm:$0xff] %vm659_vm0, %v876_v26  ;;  %2826 = vrcp.f32 %v1138_v53 }
 0x390   : > { %1770 = vrot.lane.b32.xlu1 %v3592_v19, %s3130_s14 }
 0x391   : > { %v1140_v9 = vpop.xlane.xlu2 %1139 }
 0x392   : > { %2828 = vrcp.f32 %v1140_v9 }
 0x394   : > { %v2825_v12 = vpop.eup %2824  ;;  %1355 = vrot.lane.b32.xlu0 %v3581_v14, %s3129_s18 }
 0x395   : > { %v1159_v54 = vmul.f32 %v2825_v12, %v3960_v13  ;;  %v2827_v7 = vpop.eup %2826  ;;  %v1339_v12 = vld [vmem:[#allocation2 + $0x100] sm:$0xff] }
 0x396   : > { %v879_v49 = vpop.f32.mrf.mxu1  ;;  %v1160_v30 = vmul.f32 %v2827_v7, %v3955_v61 }
 0x397   : > { %897 = vst.msk [vmem:[#allocation3 + $0x18] sm:$0xff] %vm659_vm0, %v879_v49  ;;  %1247 = vmatmul.f32.vlgmr.msra.gmra.mxu3 %v1159_v54  ;;  %v1340_v54 = vld [vmem:[#allocation2 + $0x118] sm:$0xff] }
 0x398   : > { %v2829_v14 = vpop.eup %2828  ;;  %v2715_v49 = vpack.i.bf16 %v1339_v12, %v1340_v54 }
 0x399   : > { %v1161_v20 = vmul.f32 %v2829_v14, %v3963_v38  ;;  %v1144_v45 = vpop.xlane.xlu2 %1143 }
 0x39c   : > { %1768 = vrot.lane.b32.xlu0 %v3583_v15, %s3130_s14 }
 0x39f   : > { %1250 = vmatmul.f32.gmra.mxu3 %v1160_v30  ;;  %v1752_v30 = vld [vmem:[#allocation2 + $0x130] sm:$0xff] }
 0x3a0   : > { %v1382_v19 = vpop.permute.xlu0 %1381 }
 0x3a1   : > { %2416 = vmatpush.xpose.msk.msrb.mxu1 %vm659_vm0, %v1382_v19  ;;  %2520 = vmatpush.xpose.msk.msrb.mxu3 %vm659_vm0, %v1382_v19  ;;  %v1753_v19 = vld [vmem:[#allocation2 + $0x148] sm:$0xff] }
 0x3a2   : > { %v2710_v14 = vpack.i.bf16 %v1752_v30, %v1753_v19 }
 0x3a5   : > { %v882_v13 = vpop.f32.mrf.mxu1  ;;  %2417 = vmatpush.xpose.msk.msrb.mxu1 %vm659_vm0, %v1380_v18  ;;  %2521 = vmatpush.xpose.msk.msrb.mxu3 %vm659_vm0, %v1380_v18  ;;  %v1148_v25 = vpop.xlane.xlu2 %1147  ;;  %v1755_v18 = vld [vmem:[#allocation2 + $0x178] sm:$0xff] }
 0x3a6   : > { %898 = vst.msk [vmem:[#allocation3 + $0x20] sm:$0xff] %vm659_vm0, %v882_v13  ;;  %v2700_v22 = vpack.i.bf16 %v1754_v29, %v1755_v18  ;;  %v1336_v29 = vld [vmem:[#allocation2 + $0xb8] sm:$0xff] }
 0x3a7   : > { %1253 = vmatmul.f32.gmra.mxu3 %v1161_v20 }
 0x3a8   : > { %v1791_v15 = vpop.permute.xlu0 %1790 }
 0x3a9   : > { %2441 = vmatpush.xpose.msk.msrb.mxu0 %vm659_vm0, %v1791_v15 }
 0x3aa   : > { %v1142_v61 = vpop.xlane.xlu1 %1141 }
 0x3ab   : > { %2830 = vrcp.f32 %v1142_v61 }
 0x3ac   : > { %2832 = vrcp.f32 %v1144_v45 }
 0x3ad   : > { %v1759_v63 = vpop.permute.xlu2 %1758 }
 0x3b0   : > { %v1378_v57 = vpop.permute.xlu0 %1377 }
 0x3b1   : > { %v2831_v34 = vpop.eup %2830  ;;  %2418 = vmatpush.xpose.msk.msrb.mxu1 %vm659_vm0, %v1378_v57  ;;  %2522 = vmatpush.xpose.msk.msrb.mxu3 %vm659_vm0, %v1378_v57 }
 0x3b2   : > { %v1162_v33 = vmul.f32 %v2831_v34, %v3978_v1  ;;  %v1146_v38 = vpop.xlane.xlu1 %1145  ;;  %v2833_v23 = vpop.eup %2832 }
 0x3b3   : > { %2834 = vrcp.f32 %v1146_v38  ;;  %v1163_v42 = vmul.f32 %v2833_v23, %v3966_v39 }
 0x3b4   : > { %1256 = vmatmul.f32.gmra.mxu3 %v1162_v33  ;;  %2836 = vrcp.f32 %v1148_v25  ;;  %v1333_v25 = vld [vmem:[#allocation2 + $0x70] sm:$0xff] }
 0x3b5   : > { %v1354_v36 = vpop.permute.xlu2 %1353 }
 0x3b8   : > { %v1789_v24 = vpop.permute.xlu0 %1788 }
 0x3b9   : > { %2442 = vmatpush.xpose.msk.msrb.mxu0 %vm659_vm0, %v1789_v24  ;;  %v2835_v48 = vpop.eup %2834 }
 0x3ba   : > { %v1164_v0 = vmul.f32 %v2835_v48, %v3984_v62  ;;  %v2837_v17 = vpop.eup %2836  ;;  %v1334_v48 = vld [vmem:[#allocation2 + $0x88] sm:$0xff] }
 0x3bb   : > { %v1165_v21 = vmul.f32 %v2837_v17, %v3975_v2 }
 0x3bc   : > { %1259 = vmatmul.f32.gmra.mxu3 %v1163_v42 }
 0x3bd   : > { %v1767_v4 = vpop.permute.xlu2 %1766 }
 0x3c0   : > { %v1346_v32 = vpop.permute.xlu0 %1345 }
 0x3c1   : > { %2419 = vmatmul.msk.f32.vlgmr.msrb.gmra.mxu1 %vm659_vm0, %v1346_v32  ;;  %v2745_v32 = vpack.i.bf16 %v1333_v25, %v1334_v48 }
 0x3c4   : > { %1262 = vmatmul.f32.gmra.mxu3 %v1164_v0 }
 0x3c5   : > { %v1360_v23 = vpop.permute.xlu2 %1359 }
 0x3c6   : > { %v885_v1 = vpop.f32.mrf.mxu1 }
 0x3c7   : > { %899 = vst.msk [vmem:[#allocation3 + $0x28] sm:$0xff] %vm659_vm0, %v885_v1  ;;  %v1338_v1 = vld [vmem:[#allocation2 + $0xe8] sm:$0xff] }
 0x3c8   : > { %v2725_v17 = vpack.i.bf16 %v1337_v27, %v1338_v1 }
 0x3ca   : > { %v1757_v10 = vpop.permute.xlu1 %1756 }
 0x3cb   : > { %2443 = vmatmul.msk.f32.vlgmr.msrb.gmra.mxu0 %vm659_vm0, %v1757_v10 }
 0x3cc   : > { %1265 = vmatmul.f32.gmra.mxu3 %v1165_v21 }
 0x3ce   : > { %v888_v39 = vpop.f32.mrf.mxu1 }
 0x3cf   : > { %900 = vst.msk [vmem:[#allocation3 + $0x30] sm:$0xff] %vm659_vm0, %v888_v39 }
 0x3d2   : > { %v1348_v58 = vpop.permute.xlu1 %1347 }
 0x3d3   : > { %2420 = vmatmul.msk.f32.gmra.mxu1 %vm659_vm0, %v1348_v58  ;;  %2444 = vmatmul.msk.f32.gmra.mxu0 %vm659_vm0, %v1759_v63 }
 0x3da   : > { %v1350_v62 = vpop.permute.xlu1 %1349 }
 0x3db   : > { %2421 = vmatmul.msk.f32.gmra.mxu1 %vm659_vm0, %v1350_v62 }
 0x3e2   : > { %v1761_v16 = vpop.permute.xlu1 %1760 }
 0x3e3   : > { %2445 = vmatmul.msk.f32.gmra.mxu0 %vm659_vm0, %v1761_v16 }
 0x3ea   : > { %v1763_v59 = vpop.permute.xlu1 %1762 }
 0x3eb   : > { %2446 = vmatmul.msk.f32.gmra.mxu0 %vm659_vm0, %v1763_v59  ;;  %v1150_v2 = vpop.xlane.xlu0 %1149 }
 0x3ec   : > { %2838 = vrcp.f32 %v1150_v2 }
 0x3f2   : > { %v2839_v55 = vpop.eup %2838  ;;  %v1765_v3 = vpop.permute.xlu1 %1764 }
 0x3f3   : > { %v891_v11 = vpop.f32.mrf.mxu1  ;;  %2447 = vmatmul.msk.f32.gmra.mxu0 %vm659_vm0, %v1765_v3  ;;  %v1166_v56 = vmul.f32 %v2839_v55, %v4021_v31 }
 0x3f4   : > { %901 = vst.msk [vmem:[#allocation3 + $0x38] sm:$0xff] %vm659_vm0, %v891_v11 }
 0x3f5   : > { %1268 = vmatmul.f32.gmra.mxu3 %v1166_v56 }
 0x3fa   : > { %v1358_v33 = vpop.permute.xlu1 %1357 }
 0x3fb   : > { %2448 = vmatmul.msk.f32.gmra.mxu0 %vm659_vm0, %v1767_v4 }
 0x3fd   : > { %2423 = vmatmul.msk.f32.vlgmr.msrb.gmra.mxu3 %vm659_vm0, %v1354_v36 }
 0x3fe   : > { %v1352_v40 = vpop.permute.xlu0 %1351 }
 0x3ff   : > { %2422 = vmatmul.msk.f32.gmra.mxu1 %vm659_vm0, %v1352_v40 }
 0x402   : > { %v1771_v24 = vpop.permute.xlu1 %1770 }
 0x406   : > { %v1356_v6 = vpop.permute.xlu0 %1355 }
 0x407   : > { %2424 = vmatmul.msk.f32.gmra.mxu3 %vm659_vm0, %v1356_v6 }
 0x40e   : > { %v1769_v44 = vpop.permute.xlu0 %1768 }
 0x40f   : > { %2449 = vmatmul.msk.f32.gmra.mxu0 %vm659_vm0, %v1769_v44  ;;  %2425 = vmatmul.msk.f32.gmra.mxu3 %vm659_vm0, %v1358_v33 }
 0x417   : > { %2426 = vmatmul.msk.f32.gmra.mxu3 %vm659_vm0, %v1360_v23  ;;  %2450 = vmatmul.msk.f32.gmra.mxu0 %vm659_vm0, %v1771_v24 }
 0x41a   : > { %v4149_v10 = vpop.f32.mrf.mxu3 }
 0x422   : > { %v4157_v58 = vpop.f32.mrf.mxu3 }
 0x42a   : > { %v4168_v11 = vpop.f32.mrf.mxu3 }
 0x437   : > { %v4170_v6 = vpop.f32.mrf.mxu3 }
 0x43e   : > { %v1474_v13 = vpop.f32.mrf.mxu1 }
 0x43f   : > { %v4131_v42 = vsel %vm598_vm1, %v1474_v13, -1e+30  ;;  %v4176_v18 = vpop.f32.mrf.mxu3 }
 0x447   : > { %v4179_v54 = vpop.f32.mrf.mxu3 }
 0x448   : > { %v1885_v5 = vpop.f32.mrf.mxu0 }
 0x449   : > { %v4080_v51 = vsel %vm598_vm1, %v1885_v5, -1e+30 }
 0x44a   : > { %1917 = vmax.xlane.f32.xlu2 %v4080_v51 }
 0x44f   : > { %v4182_v19 = vpop.f32.mrf.mxu3 }
 0x450   : > { %v1888_v31 = vpop.f32.mrf.mxu0  ;;  %v1477_v20 = vpop.f32.mrf.mxu1 }
 0x451   : > { %v4086_v60 = vsel %vm599_vm2, %v1888_v31, -1e+30  ;;  %v4137_v52 = vsel %vm599_vm2, %v1477_v20, -1e+30 }
 0x452   : > { %1919 = vmax.xlane.f32.xlu2 %v4086_v60 }
 0x458   : > { %v1480_v61 = vpop.f32.mrf.mxu1 }
 0x459   : > { %v4162_v62 = vsel %vm600_vm3, %v1480_v61, -1e+30 }
 0x460   : > { %v1891_v46 = vpop.f32.mrf.mxu0 }
 0x461   : > { %v4092_v8 = vsel %vm600_vm3, %v1891_v46, -1e+30 }
 0x462   : > { %1921 = vmax.xlane.f32.xlu1 %v4092_v8 }
 0x468   : > { %v1894_v26 = vpop.f32.mrf.mxu0 }
 0x469   : > { %v4098_v53 = vsel %vm601_vm4, %v1894_v26, -1e+30 }
 0x46a   : > { %2701 = vrot.lane.b32.xlu2 %v2700_v22, %s3130_s14  ;;  %1923 = vmax.xlane.f32.xlu0 %v4098_v53 }
 0x470   : > { %v1897_v9 = vpop.f32.mrf.mxu0 }
 0x471   : > { %v4105_v7 = vsel %vm602_vm5, %v1897_v9, -1e+30  ;;  %v1330_v9 = vld [vmem:[#allocation2 + $0x28] sm:$0xff] }
 0x472   : > { %2716 = vrot.lane.b32.xlu2 %v2715_v49, %s3129_s18  ;;  %1925 = vmax.xlane.f32.xlu0 %v4105_v7 }
 0x478   : > { %v1900_v15 = vpop.f32.mrf.mxu0 }
 0x479   : > { %v4143_v0 = vsel %vm603_vm8, %v1900_v15, -1e+30 }
 0x47b   : > { %2696 = vrot.lane.b32.xlu1 %v2700_v22, %s3129_s18 }
 0x47c   : > { %v1483_v34 = vpop.f32.mrf.mxu1 }
 0x47d   : > { %v4122_v38 = vsel %vm601_vm4, %v1483_v34, -1e+30 }
 0x483   : > { %2711 = vrot.lane.b32.xlu1 %v2710_v14, %s3130_s14 }
 0x486   : > { %2706 = vrot.lane.b32.xlu0 %v2710_v14, %s3129_s18  ;;  %v4185_v14 = vpop.f32.mrf.mxu3 }
 0x48b   : > { %2721 = vrot.lane.b32.xlu1 %v2715_v49, %s3130_s14  ;;  %v1329_v49 = vld [vmem:[#allocation2 + $0x10] sm:$0xff] }
 0x48c   : > { %v1903_v45 = vpop.f32.mrf.mxu0  ;;  %v2765_v30 = vpack.i.bf16 %v1329_v49, %v1330_v9 }
 0x48d   : > { %v4116_v57 = vsel %vm604_vm6, %v1903_v45, -1e+30 }
 0x48e   : > { %v1486_v61 = vpop.f32.mrf.mxu3 }
 0x496   : > { %v1489_v24 = vpop.f32.mrf.mxu3 }
 0x497   : > { %v4195_v48 = vsel %vm603_vm8, %v1489_v24, -1e+30 }
 0x49b   : > { %1929 = vmax.xlane.f32.xlu2 %v4116_v57 }
 0x4a3   : > { %1512 = vmax.xlane.f32.xlu2 %v4122_v38 }
 0x4b0   : > { %1506 = vmax.xlane.f32.xlu0 %v4131_v42 }
 0x4b5   : > { %1508 = vmax.xlane.f32.xlu1 %v4137_v52 }
 0x4bb   : > { %2751 = vrot.lane.b32.xlu2 %v2745_v32, %s3130_s14 }
 0x4bd   : > { %1927 = vmax.xlane.f32.xlu1 %v4143_v0  ;;  %v1918_v35 = vpop.xlane.xlu2 %1917 }
 0x4be   : > { %v1933_v3 = vsub.f32 %v4080_v51, %v1918_v35  ;;  %v1335_v51 = vld [vmem:[#allocation2 + $0xa0] sm:$0xff]  ;;  %v4201_v35 = vsel %vm602_vm5, %v1486_v61, -1e+30 }
 0x4bf   : > { %v2735_v22 = vpack.i.bf16 %v1335_v51, %v1336_v29 }
 0x4c0   : > { %v1941_v56 = vmul.f32 1.442695, %v1933_v3 }
 0x4c2   : > { %2840 = vpow2.f32 %v1941_v56 }
 0x4c4   : > { %2726 = vrot.lane.b32.xlu0 %v2725_v17, %s3129_s18 }
 0x4c5   : > { %v4155_v63 = vpop.xlane.xlu2 %1919 }
 0x4c6   : > { %v1934_v29 = vsub.f32 %v4086_v60, %v4155_v63 }
 0x4c8   : > { %v4172_v46 = vpop.eup %2840  ;;  %v1943_v49 = vmul.f32 1.442695, %v1934_v29 }
 0x4cd   : > { %v2702_v55 = vpop.permute.xlu2 %2701 }
 0x4ce   : > { %v2703_v26 = vunpack.i.l.bf16 %v2702_v55  ;;  %v2704_v12 = vunpack.i.h.bf16 %v2702_v55  ;;  %v1743_v55 = vld [vmem:[#allocation2 + $0x58] sm:$0xff] }
 0x4d0   : > { %2053 = vmatpush.msrb.mxu2 %v2703_v26 }
 0x4d2   : > { %2054 = vmatpush.msrb.mxu2 %v2704_v12  ;;  %v1906_v12 = vpop.f32.mrf.mxu0 }
 0x4d3   : > { %v4234_v60 = vsel %vm605_vm7, %v1906_v12, -1e+30 }
 0x4d5   : > { %v4151_v21 = vpop.xlane.xlu1 %1921  ;;  %v2717_v40 = vpop.permute.xlu2 %2716 }
 0x4d6   : > { %2746 = vrot.lane.b32.xlu1 %v2745_v32, %s3129_s18  ;;  %v2718_v5 = vunpack.i.l.bf16 %v2717_v40  ;;  %v2719_v31 = vunpack.i.h.bf16 %v2717_v40  ;;  %v1935_v41 = vsub.f32 %v4092_v8, %v4151_v21  ;;  %v2760_v8 = vpack.i.bf16 %v1742_v50, %v1743_v55 }
 0x4dd   : > { %v4153_v39 = vpop.xlane.xlu0 %1923 }
 0x4e5   : > { %v4165_v36 = vpop.xlane.xlu0 %1925 }
 0x4ed   : > { %v2697_v16 = vpop.permute.xlu1 %2696 }
 0x4ee   : > { %1510 = vmax.xlane.f32.xlu0 %v4162_v62  ;;  %v2699_v59 = vunpack.i.h.bf16 %v2697_v16  ;;  %v2698_v2 = vunpack.i.l.bf16 %v2697_v16  ;;  %v1492_v16 = vpop.f32.mrf.mxu3 }
 0x4f0   : > { %1642 = vmatpush.msra.mxu3 %v2698_v2  ;;  %v4209_v2 = vsel %vm604_vm6, %v1492_v16, -1e+30 }
 0x4f2   : > { %1643 = vmatpush.msra.mxu3 %v2699_v59  ;;  %v1945_v59 = vmul.f32 1.442695, %v1935_v41 }
 0x4f5   : > { %v2712_v45 = vpop.permute.xlu1 %2711 }
 0x4f6   : > { %v2713_v33 = vunpack.i.l.bf16 %v2712_v45  ;;  %v2714_v23 = vunpack.i.h.bf16 %v2712_v45 }
 0x4f8   : > { %v2707_v4 = vpop.permute.xlu0 %2706  ;;  %2055 = vmatpush.msrb.mxu2 %v2713_v33  ;;  %v1936_v33 = vsub.f32 %v4098_v53, %v4153_v39  ;;  %v1937_v53 = vsub.f32 %v4105_v7, %v4165_v36 }
 0x4f9   : > { %v2708_v43 = vunpack.i.l.bf16 %v2707_v4  ;;  %v2709_v44 = vunpack.i.h.bf16 %v2707_v4 }
 0x4fa   : > { %2056 = vmatpush.msrb.mxu2 %v2714_v23 }
 0x4fb   : > { %1644 = vmatpush.msra.mxu3 %v2708_v43 }
 0x4fd   : > { %1645 = vmatpush.msra.mxu3 %v2709_v44 }
 0x4ff   : > { %1646 = vmatpush.msra.mxu3 %v2718_v5 }
 0x500   : > { %1957 = vadd.xlane.f32.xlu1 %v4172_v46 }
 0x501   : > { %1647 = vmatpush.msra.mxu3 %v2719_v31 }
 0x502   : > { %2731 = vrot.lane.b32.xlu0 %v2725_v17, %s3130_s14 }
 0x50a   : > { %2736 = vrot.lane.b32.xlu0 %v2735_v22, %s3129_s18 }
 0x50e   : > { %v4218_v43 = vpop.xlane.xlu2 %1929 }
 0x50f   : > { %v1939_v7 = vsub.f32 %v4116_v57, %v4218_v43 }
 0x511   : > { %v1953_v36 = vmul.f32 1.442695, %v1939_v7 }
 0x512   : > { %2741 = vrot.lane.b32.xlu0 %v2735_v22, %s3130_s14  ;;  %v1495_v22 = vpop.f32.mrf.mxu3 }
 0x519   : > { %2766 = vrot.lane.b32.xlu1 %v2765_v30, %s3129_s18 }
 0x521   : > { %2771 = vrot.lane.b32.xlu1 %v2765_v30, %s3130_s14  ;;  %v1513_v30 = vpop.xlane.xlu2 %1512 }
 0x522   : > { %v1525_v63 = vsub.f32 %v4122_v38, %v1513_v30 }
 0x523   : > { %v1507_v13 = vpop.xlane.xlu0 %1506 }
 0x524   : > { %v1522_v20 = vsub.f32 %v4131_v42, %v1507_v13  ;;  %v2722_v42 = vpop.permute.xlu1 %2721  ;;  %v1536_v24 = vmul.f32 1.442695, %v1525_v63 }
 0x525   : > { %v2723_v27 = vunpack.i.l.bf16 %v2722_v42  ;;  %v2724_v1 = vunpack.i.h.bf16 %v2722_v42  ;;  %v1947_v42 = vmul.f32 1.442695, %v1936_v33 }
 0x526   : > { %v1530_v15 = vmul.f32 1.442695, %v1522_v20  ;;  %v4229_v20 = vsel %vm605_vm7, %v1495_v22, -1e+30 }
 0x527   : > { %2057 = vmatpush.msrb.mxu2 %v2723_v27 }
 0x528   : > { %2842 = vpow2.f32 %v1530_v15 }
 0x529   : > { %2058 = vmatpush.msrb.mxu2 %v2724_v1  ;;  %2844 = vpow2.f32 %v1945_v59  ;;  %v2752_v28 = vpop.permute.xlu2 %2751 }
 0x52a   : > { %v2753_v27 = vunpack.i.l.bf16 %v2752_v28  ;;  %v2754_v39 = vunpack.i.h.bf16 %v2752_v28 }
 0x52c   : > { %v1509_v21 = vpop.xlane.xlu1 %1508 }
 0x52d   : > { %v1523_v56 = vsub.f32 %v4137_v52, %v1509_v21 }
 0x52e   : > { %v4189_v34 = vpop.eup %2842 }
 0x52f   : > { %1546 = vadd.xlane.f32.xlu2 %v4189_v34  ;;  %v4212_v3 = vpop.eup %2844  ;;  %v1532_v4 = vmul.f32 1.442695, %v1523_v56 }
 0x531   : > { %2846 = vpow2.f32 %v1532_v4 }
 0x532   : > { %2848 = vpow2.f32 %v1943_v49 }
 0x534   : > { %v1928_v5 = vpop.xlane.xlu1 %1927 }
 0x535   : > { %v1938_v16 = vsub.f32 %v4143_v0, %v1928_v5 }
 0x536   : > { %v2727_v25 = vpop.permute.xlu0 %2726 }
 0x537   : > { %v2728_v32 = vunpack.i.l.bf16 %v2727_v25  ;;  %1516 = vmax.xlane.f32.xlu2 %v4195_v48  ;;  %v2729_v17 = vunpack.i.h.bf16 %v2727_v25  ;;  %v4220_v31 = vpop.eup %2846  ;;  %v1951_v59 = vmul.f32 1.442695, %v1938_v16 }
 0x538   : > { %v4241_v47 = vpop.eup %2848 }
 0x539   : > { %1648 = vmatpush.msra.mxu3 %v2728_v32 }
 0x53b   : > { %1649 = vmatpush.msra.mxu3 %v2729_v17  ;;  %v1949_v17 = vmul.f32 1.442695, %v1937_v53 }
 0x53c   : > { %1514 = vmax.xlane.f32.xlu0 %v4201_v35 }
 0x544   : > { %1518 = vmax.xlane.f32.xlu0 %v4209_v2 }
 0x548   : > { %v2747_v13 = vpop.permute.xlu1 %2746 }
 0x549   : > { %v2748_v61 = vunpack.i.l.bf16 %v2747_v13 }
 0x54b   : > { %1961 = vadd.xlane.f32.xlu1 %v4212_v3 }
 0x54f   : > { %2761 = vrot.lane.b32.xlu2 %v2760_v8, %s3130_s14 }
 0x558   : > { %2756 = vrot.lane.b32.xlu0 %v2760_v8, %s3129_s18 }
 0x561   : > { %v1511_v37 = vpop.xlane.xlu0 %1510 }
 0x562   : > { %v1524_v52 = vsub.f32 %v4162_v62, %v1511_v37  ;;  %v2749_v62 = vunpack.i.h.bf16 %v2747_v13 }
 0x564   : > { %v1534_v15 = vmul.f32 1.442695, %v1524_v52 }
 0x566   : > { %2850 = vpow2.f32 %v1534_v15 }
 0x567   : > { %2852 = vpow2.f32 %v1536_v24 }
 0x568   : > { %2854 = vpow2.f32 %v1947_v42 }
 0x569   : > { %2856 = vpow2.f32 %v1949_v17 }
 0x56a   : > { %2858 = vpow2.f32 %v1951_v59 }
 0x56b   : > { %2860 = vpow2.f32 %v1953_v36 }
 0x56c   : > { %v4244_v38 = vpop.eup %2850 }
 0x56d   : > { %v4249_v1 = vpop.eup %2852 }
 0x56e   : > { %v4252_v41 = vpop.eup %2854 }
 0x56f   : > { %v4256_v50 = vpop.eup %2856 }
 0x570   : > { %v4261_v8 = vpop.eup %2858 }
 0x571   : > { %v4264_v37 = vpop.eup %2860 }
 0x573   : > { %v1958_v55 = vpop.xlane.xlu1 %1957 }
 0x574   : > { %v2732_v40 = vpop.permute.xlu0 %2731  ;;  %2862 = vrcp.f32 %v1958_v55 }
 0x575   : > { %v2733_v44 = vunpack.i.l.bf16 %v2732_v40  ;;  %v2734_v51 = vunpack.i.h.bf16 %v2732_v40 }
 0x577   : > { %2059 = vmatpush.msrb.mxu2 %v2733_v44 }
 0x578   : > { %1548 = vadd.xlane.f32.xlu2 %v4220_v31 }
 0x579   : > { %2060 = vmatpush.msrb.mxu2 %v2734_v51 }
 0x57a   : > { %v2863_v22 = vpop.eup %2862 }
 0x57c   : > { %v2737_v26 = vpop.permute.xlu0 %2736 }
 0x57d   : > { %v2738_v9 = vunpack.i.l.bf16 %v2737_v26  ;;  %v2739_v45 = vunpack.i.h.bf16 %v2737_v26 }
 0x57f   : > { %1650 = vmatpush.msra.mxu3 %v2738_v9 }
 0x580   : > { %1520 = vmax.xlane.f32.xlu2 %v4229_v20 }
 0x581   : > { %1651 = vmatpush.msra.mxu3 %v2739_v45 }
 0x582   : > { %1931 = vmax.xlane.f32.xlu0 %v4234_v60 }
 0x583   : > { %1652 = vmatpush.msra.mxu3 %v2748_v61 }
 0x584   : > { %v2742_v23 = vpop.permute.xlu0 %2741 }
 0x585   : > { %v2743_v25 = vunpack.i.l.bf16 %v2742_v23  ;;  %1653 = vmatpush.msra.mxu3 %v2749_v62  ;;  %v2744_v32 = vunpack.i.h.bf16 %v2742_v23 }
 0x587   : > { %2061 = vmatpush.msrb.mxu2 %v2743_v25 }
 0x588   : > { %1959 = vadd.xlane.f32.xlu2 %v4241_v47 }
 0x589   : > { %2062 = vmatpush.msrb.mxu2 %v2744_v32 }
 0x58a   : > { %1550 = vadd.xlane.f32.xlu0 %v4244_v38 }
 0x58b   : > { %2063 = vmatpush.msrb.mxu2 %v2753_v27  ;;  %v2767_v56 = vpop.permute.xlu1 %2766 }
 0x58c   : > { %v2769_v33 = vunpack.i.h.bf16 %v2767_v56 }
 0x58d   : > { %2064 = vmatpush.msrb.mxu2 %v2754_v39 }
 0x590   : > { %1552 = vadd.xlane.f32.xlu2 %v4249_v1 }
 0x592   : > { %1963 = vadd.xlane.f32.xlu0 %v4252_v41 }
 0x593   : > { %v2772_v44 = vpop.permute.xlu1 %2771 }
 0x594   : > { %v2773_v52 = vunpack.i.l.bf16 %v2772_v44  ;;  %v2774_v26 = vunpack.i.h.bf16 %v2772_v44 }
 0x59a   : > { %1965 = vadd.xlane.f32.xlu0 %v4256_v50 }
 0x5a2   : > { %v1547_v21 = vpop.xlane.xlu2 %1546  ;;  %1967 = vadd.xlane.f32.xlu0 %v4261_v8 }
 0x5aa   : > { %v1517_v0 = vpop.xlane.xlu2 %1516  ;;  %1969 = vadd.xlane.f32.xlu0 %v4264_v37 }
 0x5ab   : > { %v1527_v29 = vsub.f32 %v4195_v48, %v1517_v0 }
 0x5ad   : > { %v1540_v12 = vmul.f32 1.442695, %v1527_v29 }
 0x5af   : > { %v1515_v4 = vpop.xlane.xlu0 %1514 }
 0x5b0   : > { %v1526_v40 = vsub.f32 %v4201_v35, %v1515_v4  ;;  %v1981_v35 = vmul.f32 %v2863_v22, %v4172_v46  ;;  %v2768_v46 = vunpack.i.l.bf16 %v2767_v56 }
 0x5b2   : > { %v1538_v57 = vmul.f32 1.442695, %v1526_v40  ;;  %v2762_v43 = vpop.permute.xlu2 %2761 }
 0x5b3   : > { %v2763_v5 = vunpack.i.l.bf16 %v2762_v43  ;;  %v2764_v51 = vunpack.i.h.bf16 %v2762_v43 }
 0x5b4   : > { %2864 = vpow2.f32 %v1538_v57 }
 0x5b5   : > { %2065 = vmatpush.msrb.mxu2 %v2763_v5  ;;  %2866 = vpow2.f32 %v1540_v12 }
 0x5b7   : > { %2066 = vmatpush.msrb.mxu2 %v2764_v51  ;;  %v1519_v49 = vpop.xlane.xlu0 %1518 }
 0x5b8   : > { %v1528_v30 = vsub.f32 %v4209_v2, %v1519_v49 }
 0x5b9   : > { %2067 = vmatpush.msrb.mxu2 %v2773_v52 }
 0x5ba   : > { %v4269_v9 = vpop.eup %2864  ;;  %v1542_v48 = vmul.f32 1.442695, %v1528_v30 }
 0x5bb   : > { %1554 = vadd.xlane.f32.xlu2 %v4269_v9  ;;  %2068 = vmatpush.msrb.mxu2 %v2774_v26  ;;  %v4274_v13 = vpop.eup %2866 }
 0x5bc   : > { %2069 = vmatmul.f32.vlgmr.msrb.gmra.mxu2 %v1981_v35  ;;  %2868 = vpow2.f32 %v1542_v48 }
 0x5bd   : > { %2870 = vrcp.f32 %v1547_v21 }
 0x5be   : > { %v1962_v59 = vpop.xlane.xlu1 %1961 }
 0x5c2   : > { %v4277_v15 = vpop.eup %2868 }
 0x5c3   : > { %1556 = vadd.xlane.f32.xlu2 %v4274_v13  ;;  %v2871_v62 = vpop.eup %2870 }
 0x5c4   : > { %v1570_v2 = vmul.f32 %v2871_v62, %v4189_v34 }
 0x5ca   : > { %v2757_v61 = vpop.permute.xlu0 %2756 }
 0x5cb   : > { %v2758_v45 = vunpack.i.l.bf16 %v2757_v61  ;;  %1558 = vadd.xlane.f32.xlu2 %v4277_v15  ;;  %v2759_v63 = vunpack.i.h.bf16 %v2757_v61 }
 0x5cd   : > { %1654 = vmatpush.msra.mxu3 %v2758_v45  ;;  %v2158_v45 = vld [vmem:[#allocation9 + $0x78] sm:$0xff] }
 0x5ce   : > { %2163 = vmatpush.msra.mxu1 %v2158_v45 }
 0x5cf   : > { %1655 = vmatpush.msra.mxu3 %v2759_v63  ;;  %v2156_v63 = vld [vmem:[#allocation9 + $0x68] sm:$0xff] }
 0x5d1   : > { %1656 = vmatpush.msra.mxu3 %v2768_v46  ;;  %v2157_v46 = vld [vmem:[#allocation9 + $0x70] sm:$0xff] }
 0x5d2   : > { %2164 = vmatpush.msra.mxu1 %v2157_v46 }
 0x5d3   : > { %1657 = vmatpush.msra.mxu3 %v2769_v33  ;;  %v2155_v33 = vld [vmem:[#allocation9 + $0x60] sm:$0xff] }
 0x5d4   : > { %1658 = vmatmul.f32.vlgmr.msra.gmra.mxu3 %v1570_v2  ;;  %2165 = vmatpush.msra.mxu1 %v2156_v63  ;;  %v2154_v2 = vld [vmem:[#allocation9 + $0x58] sm:$0xff] }
 0x5d6   : > { %2166 = vmatpush.msra.mxu1 %v2155_v33 }
 0x5d8   : > { %2167 = vmatpush.msra.mxu1 %v2154_v2 }
 0x5eb   : > { %v1549_v23 = vpop.xlane.xlu2 %1548 }
 0x5ec   : > { %2872 = vrcp.f32 %v1549_v23  ;;  %v2153_v23 = vld [vmem:[#allocation9 + $0x50] sm:$0xff] }
 0x5ed   : > { %2168 = vmatpush.msra.mxu1 %v2153_v23 }
 0x5f2   : > { %v2873_v24 = vpop.eup %2872 }
 0x5f3   : > { %v1521_v25 = vpop.xlane.xlu2 %1520  ;;  %v1571_v28 = vmul.f32 %v2873_v24, %v4220_v31  ;;  %v2152_v24 = vld [vmem:[#allocation9 + $0x48] sm:$0xff] }
 0x5f4   : > { %v1529_v42 = vsub.f32 %v4229_v20, %v1521_v25  ;;  %2169 = vmatpush.msra.mxu1 %v2152_v24 }
 0x5f5   : > { %v1932_v32 = vpop.xlane.xlu0 %1931  ;;  %1661 = vmatmul.f32.gmra.mxu3 %v1571_v28  ;;  %v2151_v28 = vld [vmem:[#allocation9 + $0x40] sm:$0xff] }
 0x5f6   : > { %v1544_v27 = vmul.f32 1.442695, %v1529_v42  ;;  %v1940_v53 = vsub.f32 %v4234_v60, %v1932_v32  ;;  %2170 = vmatpush.msra.mxu1 %v2151_v28  ;;  %v2150_v42 = vld [vmem:[#allocation9 + $0x38] sm:$0xff]  ;;  %v2149_v32 = vld [vmem:[#allocation9 + $0x30] sm:$0xff] }
 0x5f8   : > { %2874 = vpow2.f32 %v1544_v27  ;;  %v1955_v39 = vmul.f32 1.442695, %v1940_v53  ;;  %2171 = vmatpush.msra.mxu1 %v2150_v42  ;;  %v2148_v27 = vld [vmem:[#allocation9 + $0x28] sm:$0xff] }
 0x5fa   : > { %2876 = vpow2.f32 %v1955_v39  ;;  %2172 = vmatpush.msra.mxu1 %v2149_v32  ;;  %v2147_v39 = vld [vmem:[#allocation9 + $0x20] sm:$0xff] }
 0x5fb   : > { %v1960_v17 = vpop.xlane.xlu2 %1959 }
 0x5fc   : > { %2878 = vrcp.f32 %v1960_v17  ;;  %2173 = vmatpush.msra.mxu1 %v2148_v27  ;;  %v2146_v17 = vld [vmem:[#allocation9 + $0x18] sm:$0xff] }
 0x5fd   : > { %v1551_v34 = vpop.xlane.xlu0 %1550 }
 0x5fe   : > { %v4284_v16 = vpop.eup %2874  ;;  %2880 = vrcp.f32 %v1551_v34  ;;  %2174 = vmatpush.msra.mxu1 %v2147_v39  ;;  %v2145_v34 = vld [vmem:[#allocation9 + $0x10] sm:$0xff] }
 0x5ff   : > { %1560 = vadd.xlane.f32.xlu2 %v4284_v16  ;;  %2882 = vrcp.f32 %v1962_v59 }
 0x600   : > { %v4287_v31 = vpop.eup %2876  ;;  %2175 = vmatpush.msra.mxu1 %v2146_v17 }
 0x601   : > { %1971 = vadd.xlane.f32.xlu0 %v4287_v31 }
 0x602   : > { %v2879_v20 = vpop.eup %2878  ;;  %2176 = vmatpush.msra.mxu1 %v2145_v34 }
 0x603   : > { %v1553_v7 = vpop.xlane.xlu2 %1552  ;;  %v1982_v60 = vmul.f32 %v2879_v20, %v4241_v47  ;;  %v2143_v20 = vld [vmem:[#allocation9] sm:$0xff] }
 0x604   : > { %v2881_v36 = vpop.eup %2880  ;;  %2884 = vrcp.f32 %v1553_v7 }
 0x605   : > { %v1964_v55 = vpop.xlane.xlu0 %1963  ;;  %2072 = vmatmul.f32.gmra.mxu2 %v1982_v60  ;;  %v1572_v21 = vmul.f32 %v2881_v36, %v4244_v38  ;;  %v2883_v56 = vpop.eup %2882 }
 0x606   : > { %2886 = vrcp.f32 %v1964_v55  ;;  %v1983_v4 = vmul.f32 %v2883_v56, %v4212_v3 }
 0x607   : > { %1664 = vmatmul.f32.gmra.mxu3 %v1572_v21 }
 0x60a   : > { %v2885_v0 = vpop.eup %2884 }
 0x60b   : > { %v1573_v57 = vmul.f32 %v2885_v0, %v4249_v1 }
 0x60c   : > { %v2887_v43 = vpop.eup %2886 }
 0x60d   : > { %v1966_v40 = vpop.xlane.xlu0 %1965  ;;  %2075 = vmatmul.f32.gmra.mxu2 %v1983_v4  ;;  %v1984_v47 = vmul.f32 %v2887_v43, %v4252_v41 }
 0x60e   : > { %2888 = vrcp.f32 %v1966_v40 }
 0x60f   : > { %1667 = vmatmul.f32.gmra.mxu3 %v1573_v57 }
 0x614   : > { %v2889_v38 = vpop.eup %2888 }
 0x615   : > { %v1968_v44 = vpop.xlane.xlu0 %1967  ;;  %2078 = vmatmul.f32.gmra.mxu2 %v1984_v47  ;;  %v1985_v5 = vmul.f32 %v2889_v38, %v4256_v50 }
 0x616   : > { %2890 = vrcp.f32 %v1968_v44 }
 0x617   : > { %1280 = vrot.lane.b32.xlu2 %v4149_v10, %s3130_s14 }
 0x61c   : > { %v2891_v51 = vpop.eup %2890 }
 0x61d   : > { %2081 = vmatmul.f32.gmra.mxu2 %v1985_v5  ;;  %v1970_v3 = vpop.xlane.xlu0 %1969  ;;  %v1986_v1 = vmul.f32 %v2891_v51, %v4261_v8 }
 0x61e   : > { %2892 = vrcp.f32 %v1970_v3 }
 0x624   : > { %v2893_v29 = vpop.eup %2892 }
 0x625   : > { %2084 = vmatmul.f32.gmra.mxu2 %v1986_v1  ;;  %v1987_v52 = vmul.f32 %v2893_v29, %v4264_v37 }
 0x62d   : > { %2087 = vmatmul.f32.gmra.mxu2 %v1987_v52 }
 0x62e   : > { %v1555_v41 = vpop.xlane.xlu2 %1554 }
 0x62f   : > { %2894 = vrcp.f32 %v1555_v41 }
 0x635   : > { %v2895_v22 = vpop.eup %2894 }
 0x636   : > { %v1557_v26 = vpop.xlane.xlu2 %1556  ;;  %v1574_v10 = vmul.f32 %v2895_v22, %v4269_v9 }
 0x637   : > { %2896 = vrcp.f32 %v1557_v26 }
 0x638   : > { %1670 = vmatmul.f32.gmra.mxu3 %v1574_v10 }
 0x63d   : > { %v2897_v50 = vpop.eup %2896 }
 0x63e   : > { %v1559_v12 = vpop.xlane.xlu2 %1558  ;;  %v1575_v49 = vmul.f32 %v2897_v50, %v4274_v13 }
 0x63f   : > { %2898 = vrcp.f32 %v1559_v12  ;;  %v2070_v35 = vpop.f32.mrf.mxu2 }
 0x640   : > { %2102 = vrot.lane.b32.xlu0 %v2070_v35, %s3128_s28  ;;  %1673 = vmatmul.f32.gmra.mxu3 %v1575_v49 }
 0x645   : > { %v2899_v8 = vpop.eup %2898 }
 0x646   : > { %v1576_v37 = vmul.f32 %v2899_v8, %v4277_v15 }
 0x648   : > { %1282 = vrot.lane.b32.xlu0 %v4157_v58, %s3130_s14  ;;  %1676 = vmatmul.f32.gmra.mxu3 %v1576_v37 }
 0x650   : > { %1284 = vrot.lane.b32.xlu0 %v4168_v11, %s3130_s14 }
 0x657   : > { %v1659_v9 = vpop.f32.mrf.mxu3 }
 0x658   : > { %1286 = vrot.lane.b32.xlu0 %v4170_v6, %s3130_s14  ;;  %1691 = vrot.lane.b32.xlu1 %v1659_v9, %s3129_s18 }
 0x660   : > { %1288 = vrot.lane.b32.xlu0 %v4176_v18, %s3130_s14 }
 0x668   : > { %1290 = vrot.lane.b32.xlu0 %v4179_v54, %s3130_s14 }
 0x670   : > { %1292 = vrot.lane.b32.xlu0 %v4182_v19, %s3130_s14 }
 0x672   : > { %v1561_v58 = vpop.xlane.xlu2 %1560 }
 0x673   : > { %2900 = vrcp.f32 %v1561_v58 }
 0x674   : > { %v1972_v30 = vpop.xlane.xlu0 %1971 }
 0x675   : > { %2902 = vrcp.f32 %v1972_v30  ;;  %v2775_v30 = vld [vmem:[%s4428_s3] ss:$0 sm:$0xff] }
 0x678   : > { %1294 = vrot.lane.b32.xlu0 %v4185_v14, %s3130_s14  ;;  %v1662_v11 = vpop.f32.mrf.mxu3 }
 0x679   : > { %v2901_v6 = vpop.eup %2900  ;;  %1693 = vrot.lane.b32.xlu2 %v1662_v11, %s3129_s18 }
 0x67a   : > { %v1281_v48 = vpop.permute.xlu2 %1280  ;;  %v1577_v18 = vmul.f32 %v2901_v6, %v4284_v16  ;;  %v2144_v16 = vld [vmem:[#allocation9 + $0x8] sm:$0xff] }
 0x67b   : > { %v2903_v13 = vpop.eup %2902  ;;  %1305 = vst.msk [vmem:[#allocation3] sm:$0xff] %vm1304_vm9, %v1281_v48  ;;  %2177 = vmatpush.msra.mxu1 %v2144_v16 }
 0x67c   : > { %1679 = vmatmul.f32.gmra.mxu3 %v1577_v18  ;;  %v1988_v54 = vmul.f32 %v2903_v13, %v4287_v31 }
 0x67d   : > { %2178 = vmatpush.msra.mxu1 %v2143_v20 }
 0x67e   : > { %2090 = vmatmul.f32.gmra.mxu2 %v1988_v54 }
 0x688   : > { %v2073_v19 = vpop.f32.mrf.mxu2 }
 0x689   : > { %2104 = vrot.lane.b32.xlu1 %v2073_v19, %s3128_s28 }
 0x68a   : > { %v1665_v15 = vpop.f32.mrf.mxu3 }
 0x68b   : > { %1695 = vrot.lane.b32.xlu2 %v1665_v15, %s3129_s18 }
 0x690   : > { %v2076_v14 = vpop.f32.mrf.mxu2 }
 0x691   : > { %2106 = vrot.lane.b32.xlu1 %v2076_v14, %s3128_s28 }
 0x692   : > { %v1668_v61 = vpop.f32.mrf.mxu3 }
 0x693   : > { %1697 = vrot.lane.b32.xlu2 %v1668_v61, %s3129_s18 }
 0x698   : > { %v2079_v62 = vpop.f32.mrf.mxu2 }
 0x699   : > { %2108 = vrot.lane.b32.xlu1 %v2079_v62, %s3128_s28 }
 0x6a0   : > { %v2082_v25 = vpop.f32.mrf.mxu2 }
 0x6a1   : > { %2110 = vrot.lane.b32.xlu1 %v2082_v25, %s3128_s28 }
 0x6a8   : > { %v2085_v53 = vpop.f32.mrf.mxu2 }
 0x6a9   : > { %2112 = vrot.lane.b32.xlu1 %v2085_v53, %s3128_s28 }
 0x6b0   : > { %v2088_v59 = vpop.f32.mrf.mxu2 }
 0x6b1   : > { %2114 = vrot.lane.b32.xlu1 %v2088_v59, %s3128_s28 }
 0x6b2   : > { %v2103_v31 = vpop.permute.xlu0 %2102 }
 0x6ba   : > { %v1283_v7 = vpop.permute.xlu0 %1282 }
 0x6bb   : > { %1306 = vst.msk [vmem:[#allocation3 + $0x8] sm:$0xff] %vm1304_vm9, %v1283_v7  ;;  %v1671_v60 = vpop.f32.mrf.mxu3 }
 0x6bc   : > { %1699 = vrot.lane.b32.xlu2 %v1671_v60, %s3129_s18 }
 0x6c2   : > { %v1285_v36 = vpop.permute.xlu0 %1284 }
 0x6c3   : > { %1307 = vst.msk [vmem:[#allocation3 + $0x10] sm:$0xff] %vm1304_vm9, %v1285_v36  ;;  %v1674_v55 = vpop.f32.mrf.mxu3 }
 0x6c4   : > { %1701 = vrot.lane.b32.xlu2 %v1674_v55, %s3129_s18 }
 0x6ca   : > { %v1287_v21 = vpop.permute.xlu0 %1286  ;;  %v1692_v56 = vpop.permute.xlu1 %1691 }
 0x6cb   : > { %1308 = vst.msk [vmem:[#allocation3 + $0x18] sm:$0xff] %vm1304_vm9, %v1287_v21  ;;  %v1677_v0 = vpop.f32.mrf.mxu3 }
 0x6cc   : > { %1716 = vst.msk [vmem:[#allocation3] sm:$0xff] %vm1715_vm10, %v1692_v56  ;;  %1703 = vrot.lane.b32.xlu2 %v1677_v0, %s3129_s18 }
 0x6cd   : > { %2127 = vst.msk [vmem:[#allocation3] sm:$0xff] %vm2126_vm11, %v2103_v31 }
 0x6d2   : > { %v1289_v4 = vpop.permute.xlu0 %1288 }
 0x6d3   : > { %1309 = vst.msk [vmem:[#allocation3 + $0x20] sm:$0xff] %vm1304_vm9, %v1289_v4  ;;  %v1694_v40 = vpop.permute.xlu2 %1693 }
 0x6d4   : > { %1717 = vst.msk [vmem:[#allocation3 + $0x8] sm:$0xff] %vm1715_vm10, %v1694_v40  ;;  %v2135_v57 = vld [vmem:[#allocation3] sm:$0xff] }
 0x6d5   : > { %2179 = vmatmul.f32.vlgmr.msra.gmra.mxu1 %v2135_v57 }
 0x6da   : > { %v1291_v43 = vpop.permute.xlu0 %1290 }
 0x6db   : > { %1310 = vst.msk [vmem:[#allocation3 + $0x28] sm:$0xff] %vm1304_vm9, %v1291_v43 }
 0x6e2   : > { %v1293_v47 = vpop.permute.xlu0 %1292 }
 0x6e3   : > { %1311 = vst.msk [vmem:[#allocation3 + $0x30] sm:$0xff] %vm1304_vm9, %v1293_v47 }
 0x6e5   : > { %v1696_v44 = vpop.permute.xlu2 %1695 }
 0x6e6   : > { %1718 = vst.msk [vmem:[#allocation3 + $0x10] sm:$0xff] %vm1715_vm10, %v1696_v44 }
 0x6ea   : > { %v1295_v38 = vpop.permute.xlu0 %1294 }
 0x6eb   : > { %1312 = vst.msk [vmem:[#allocation3 + $0x38] sm:$0xff] %vm1304_vm9, %v1295_v38 }
 0x6ed   : > { %v1698_v5 = vpop.permute.xlu2 %1697 }
 0x6ee   : > { %1719 = vst.msk [vmem:[#allocation3 + $0x18] sm:$0xff] %vm1715_vm10, %v1698_v5 }
 0x6fb   : > { %v2105_v3 = vpop.permute.xlu1 %2104 }
 0x6fc   : > { %2128 = vst.msk [vmem:[#allocation3 + $0x8] sm:$0xff] %vm2126_vm11, %v2105_v3 }
 0x6ff   : > { %v1680_v51 = vpop.f32.mrf.mxu3 }
 0x700   : > { %1705 = vrot.lane.b32.xlu2 %v1680_v51, %s3129_s18  ;;  %s3008_s18 = sshra.s32 %s2230_s13, 4  ;;  %s3009_s18 = int_to_ptr.hbm [resolvable:$true] %s3008_s18 }
 0x701   : > { %v2091_v1 = vpop.f32.mrf.mxu2  ;;  %s3010_s21 = scalar_lea.hbm %s3009_s18, 64 }
 0x702   : > { %2116 = vrot.lane.b32.xlu1 %v2091_v1, %s3128_s28  ;;  %s4461_s28 = smov %s4460_s15  ;;  %p3011_p1 = scmp.ne.s32.totalorder %s3009_s18, %s3010_s21 }
 0x703   : > { %v2107_v29 = vpop.permute.xlu1 %2106  ;;  %v2136_v52 = vld [vmem:[#allocation3 + $0x8] sm:$0xff]  ;;  %s3014_s26 = scalar_lea.hbm %s4461_s28, 256  ;;  %p3015_p2 = scmp.lt.s32.totalorder %s3009_s18, %s4461_s28 }
 0x704   : > { %2129 = vst.msk [vmem:[#allocation3 + $0x10] sm:$0xff] %vm2126_vm11, %v2107_v29  ;;  %2182 = vmatmul.f32.gmra.mxu1 %v2136_v52  ;;  %p3012_p4 = pnand %p3011_p1, %p3228_p6  ;;  %p3016_p3 = scmp.lt.s32.totalorder %s3014_s26, %s3010_s21 }
 0x706   : > { %p3013_p0 = pneg %p3012_p4  ;;  %p3017_p5 = por %p3016_p3, %p3015_p2 }
 0x708   : > { %p3018_p7 = pnand %p3017_p5, %p3013_p0 }
 0x70b   : > { %v2109_v41 = vpop.permute.xlu1 %2108  ;;  %v2137_v22 = vld [vmem:[#allocation3 + $0x10] sm:$0xff] }
 0x70c   : > { %2130 = vst.msk [vmem:[#allocation3 + $0x18] sm:$0xff] %vm2126_vm11, %v2109_v41  ;;  %2185 = vmatmul.f32.gmra.mxu1 %v2137_v22 }
 0x713   : > { %v2111_v26 = vpop.permute.xlu1 %2110  ;;  %v2138_v10 = vld [vmem:[#allocation3 + $0x18] sm:$0xff] }
 0x714   : > { %2188 = vmatmul.f32.gmra.mxu1 %v2138_v10 }
 0x716   : > { %v1700_v50 = vpop.permute.xlu2 %1699 }
 0x717   : > { %1720 = vst.msk [vmem:[#allocation3 + $0x20] sm:$0xff] %vm1715_vm10, %v1700_v50 }
 0x718   : > { %2131 = vst.msk [vmem:[#allocation3 + $0x20] sm:$0xff] %vm2126_vm11, %v2111_v26 }
 0x71b   : > { %v2113_v12 = vpop.permute.xlu1 %2112 }
 0x71e   : > { %v1702_v49 = vpop.permute.xlu2 %1701 }
 0x71f   : > { %1721 = vst.msk [vmem:[#allocation3 + $0x28] sm:$0xff] %vm1715_vm10, %v1702_v49  ;;  %v2139_v35 = vld [vmem:[#allocation3 + $0x20] sm:$0xff] }
 0x720   : > { %2132 = vst.msk [vmem:[#allocation3 + $0x28] sm:$0xff] %vm2126_vm11, %v2113_v12  ;;  %2191 = vmatmul.f32.gmra.mxu1 %v2139_v35 }
 0x723   : > { %v2115_v37 = vpop.permute.xlu1 %2114 }
 0x726   : > { %v1704_v8 = vpop.permute.xlu2 %1703 }
 0x727   : > { %1722 = vst.msk [vmem:[#allocation3 + $0x30] sm:$0xff] %vm1715_vm10, %v1704_v8  ;;  %v2140_v9 = vld [vmem:[#allocation3 + $0x28] sm:$0xff] }
 0x728   : > { %2133 = vst.msk [vmem:[#allocation3 + $0x30] sm:$0xff] %vm2126_vm11, %v2115_v37  ;;  %2194 = vmatmul.f32.gmra.mxu1 %v2140_v9 }
 0x72f   : > { %v2141_v58 = vld [vmem:[#allocation3 + $0x30] sm:$0xff] }
 0x730   : > { %2197 = vmatmul.f32.gmra.mxu1 %v2141_v58 }
 0x752   : > { %v2180_v11 = vpop.f32.mrf.mxu1 }
 0x753   : > { %v2181_v6 = vadd.f32 %v2775_v30, %v2180_v11 }
 0x755   : > { %2204 = vst [vmem:[%s3310_s30] sm:$0xff] %v2181_v6 }
 0x75a   : > { %v1706_v48 = vpop.permute.xlu2 %1705 }
 0x75b   : > { %1723 = vst.msk [vmem:[#allocation3 + $0x38] sm:$0xff] %vm1715_vm10, %v1706_v48 }
 0x774   : > { %v2117_v18 = vpop.permute.xlu1 %2116 }
 0x775   : > { %2134 = vst.msk [vmem:[#allocation3 + $0x38] sm:$0xff] %vm2126_vm11, %v2117_v18 }
 0x77c   : > { %v2142_v13 = vld [vmem:[#allocation3 + $0x38] sm:$0xff] }
 0x77d   : > { %2200 = vmatmul.f32.gmra.mxu1 %v2142_v13 }
 0x781   : > { %v2183_v54 = vpop.f32.mrf.mxu1 }
 0x782   : > { %v2184_v19 = vadd.f32 %v2775_v30, %v2183_v54 }
 0x784   : > { %2205 = vst [vmem:[%s3310_s30 + $0x8] sm:$0xff] %v2184_v19 }
 0x789   : > { %v2186_v15 = vpop.f32.mrf.mxu1 }
 0x78a   : > { %v2187_v14 = vadd.f32 %v2775_v30, %v2186_v15 }
 0x78c   : > { %2206 = vst [vmem:[%s3310_s30 + $0x10] sm:$0xff] %v2187_v14 }
 0x791   : > { %v2189_v61 = vpop.f32.mrf.mxu1 }
 0x792   : > { %v2190_v45 = vadd.f32 %v2775_v30, %v2189_v61 }
 0x794   : > { %2207 = vst [vmem:[%s3310_s30 + $0x18] sm:$0xff] %v2190_v45 }
 0x79d   : > { %v2192_v46 = vpop.f32.mrf.mxu1 }
 0x79e   : > { %v2193_v63 = vadd.f32 %v2775_v30, %v2192_v46 }
 0x7a0   : > { %2208 = vst [vmem:[%s3310_s30 + $0x20] sm:$0xff] %v2193_v63 }
 0x7a5   : > { %v2195_v62 = vpop.f32.mrf.mxu1 }
 0x7a6   : > { %v2196_v33 = vadd.f32 %v2775_v30, %v2195_v62 }
 0x7a8   : > { %2209 = vst [vmem:[%s3310_s30 + $0x28] sm:$0xff] %v2196_v33 }
 0x7ad   : > { %v2198_v2 = vpop.f32.mrf.mxu1 }
 0x7ae   : > { %v2199_v23 = vadd.f32 %v2775_v30, %v2198_v2 }
 0x7b0   : > { %2210 = vst [vmem:[%s3310_s30 + $0x30] sm:$0xff] %v2199_v23 }
 0x7fa   : > { %v2201_v24 = vpop.f32.mrf.mxu1 }
 0x7fb   : > { %v2202_v25 = vadd.f32 %v2775_v30, %v2201_v24 }
 0x7fd   : > { %2211 = vst [vmem:[%s3310_s30 + $0x38] sm:$0xff] %v2202_v25 }
 0x7fe   : > { %3021 = shalt.err (!%p3018_p7)
}
 0x7ff   : > { %s3131_s4 = smov 128   ;;  %s3132_s30 = smov 8  }
 0x800   : > { %2533 = dma.vmem_to_hbm [thread:$0]  (%p3228_p6), %s2228_s6, 1024, %s2230_s13, %s2213_s9, %s3131_s4, %s3131_s4, %s3132_s30  }
 0x801 PF: > { %s4462_s11 = sld [smem:[#allocation14_spill]]  ;;  %p2555_p8 = scmp.ge.s32.totalorder %s3120_s25, 2 }
 0x803   : > { %p2547_p9 = pnand %p2555_p8, %p3234_p10 }
 0x805   : > { %p2548_p12 = pneg %p2547_p9 }
 0x807   : > { %s2244_s12 = sand.u32 1, %s4462_s11  }
 0x808   : > { %s2245_s5 = scalar_lea.sflag [#allocation6], %s2244_s12 }
 0x809   : > { %3075 = dma.done.wait (%p2548_p12), %s2245_s5, 1024  }
 0x80a   : > { %3077 = vsyncadd (%p2548_p12), %s2245_s5, 4294966272  ;;  %s21_s25 = sadd.s32 1, %s3120_s25   ;;  %s4464_s21 = sld [smem:[#allocation15_spill]] }
 0x80b   : > { %p18_p13 = scmp.ge.s32.totalorder %s21_s25, 6   ;;  %s4465_s23 = sld [smem:[#allocation18_spill]] }
 0x80c   : > { %s4466_s8 = sld [smem:[#allocation19_spill]]  ;;  %s4467_s15 = smov %s3084_s16 }
 0x80d   : > { %s4468_s16 = smov %s3088_s17  ;;  %s4469_s17 = smov %s3282_s2 }
 0x80e   : > { %s4470_s18 = smov %s3096_s19  ;;  %s4471_s19 = smov %s3100_s20 }
 0x80f   : > { %s4472_s20 = smov %s3279_s1  ;;  %s4473_s22 = smov %s3116_s24 }
 0x810   :  { %20 = sbr.rel (!%p18_p13) target bundleno = 14 (0xe), region = 94 }
 0x812   : > { %s4474_s24 = smov %s4466_s8 }
 0x815   :  { %2251 = vsyncpa [#allocation5], 1 }
 0x816   :  { %2253 = vsyncpa [#allocation5 + $0x1], 1 }
 0x817   :  { %2254 = vsyncpa [#allocation8], 1 }
 0x818   :  { %2255 = vsyncpa [#allocation6], 1 }
 0x819   :  { %2257 = vsyncpa [#allocation6 + $0x1], 1 }

</bundles_post_ra>
